<compile_context>
chip_gen: v5e
topology: v5e:2x2
jax: 0.10.0
libtpu: 0.0.40
codegen_flags: <defaults>
</compile_context>

<pallas_src>
import functools
import math

import jax
import jax.numpy as jnp
from jax import lax
from jax.experimental import pallas as pl
from jax.experimental.pallas import tpu as pltpu

EPS = 1e-5  # nn.LayerNorm default eps
_PREC = lax.Precision.HIGHEST  # keep fp32 MXU matmuls accurate on real hardware


# ------------------------------ fused Pallas kernel ---------------------------


def mha_conv_kernel(x_ref, pe_ref, ln1w_ref, ln1b_ref, w_in_ref, b_in_ref,
                    w_out_ref, b_out_ref, ln2w_ref, ln2b_ref, o_ref, *, n_head):
    """One grid step = one tile of tokens, full pipeline:
    LN1 -> +PE -> QKV proj -> attention over batch axis -> out proj -> 2x -> LN2.

    Layout: channels on sublanes, tokens on lanes. x_ref/o_ref: (B, C, tT),
    pe_ref: (C, tT), weights applied as W @ y_columns.
    """
    B, C, tT = x_ref.shape
    H = n_head
    dh = C // H

    pe = pe_ref[...]                                   # (C, tT)
    ln1w, ln1b = ln1w_ref[...], ln1b_ref[...]          # (C, 1), lane-broadcast
    ln2w, ln2b = ln2w_ref[...], ln2b_ref[...]
    w_in, b_in = w_in_ref[...], b_in_ref[...]          # (3C, C), (3C, 1)
    w_out, b_out = w_out_ref[...], b_out_ref[...]      # (C, C), (C, 1)

    def layernorm_cols(a, w, b):
        # Normalize each token column over the C (sublane) axis.
        mu = jnp.mean(a, axis=0, keepdims=True)
        var = jnp.mean(jnp.square(a - mu), axis=0, keepdims=True)
        return (a - mu) * lax.rsqrt(var + EPS) * w + b

    # ---- LayerNorm + positional encoding + fused QKV projection (per batch) --
    qh, kh, vh = [], [], []                            # [b][h] -> (dh, tT)
    for b in range(B):
        y = layernorm_cols(x_ref[b], ln1w, ln1b) + pe                  # (C, tT)
        qkv = jnp.dot(w_in, y, preferred_element_type=jnp.float32,
                      precision=_PREC) + b_in                          # (3C, tT)
        # 1/sqrt(dh) is already folded into the Q rows of w_in / b_in.
        qh.append([qkv[0 * C + h * dh: 0 * C + (h + 1) * dh] for h in range(H)])
        kh.append([qkv[1 * C + h * dh: 1 * C + (h + 1) * dh] for h in range(H)])
        vh.append([qkv[2 * C + h * dh: 2 * C + (h + 1) * dh] for h in range(H)])

    # ---- attention over the batch axis (L = B, tiny), per (token-lane, head) -
    # VPU multiplies + sublane reductions + EUP exp; exact softmax divide (the
    # denominator is only a (1, tT) tile). All arrays stay lane-dense in T.
    for i in range(B):
        ctx_heads = []
        for h in range(H):
            s = [jnp.sum(qh[i][h] * kh[j][h], axis=0, keepdims=True)   # (1, tT)
                 for j in range(B)]
            m = s[0]
            for j in range(1, B):
                m = jnp.maximum(m, s[j])
            e = [jnp.exp(sj - m) for sj in s]
            denom = e[0]
            for j in range(1, B):
                denom = denom + e[j]
            inv = 1.0 / denom                        # exact: keeps kernel within fp32 tolerance
            ctx_h = (e[0] * inv) * vh[0][h]                            # (dh, tT)
            for j in range(1, B):
                ctx_h = ctx_h + (e[j] * inv) * vh[j][h]
            ctx_heads.append(ctx_h)
        ctx = jnp.concatenate(ctx_heads, axis=0)                       # (C, tT)

        # ---- out-proj, output + dropout(output) (eval => 2x), final LayerNorm
        z = jnp.dot(w_out, ctx, preferred_element_type=jnp.float32,
                    precision=_PREC) + b_out
        z = z + z
        o_ref[i] = layernorm_cols(z, ln2w, ln2b)                       # (C, tT)


# --------------------------------- wrapper ------------------------------------


def _token_tile(T, target=512):
    # Tile must be a multiple of 128 lanes or cover the whole axis. Every token
    # is processed independently, so a partial last block is safe.
    if T <= target:
        return T
    return target


def mha_conv_forward(x, params, *, n_head):
    """x: (B, C, T) float32 -> (B, C, T) float32 (eval-mode forward)."""
    B, C, T = x.shape
    assert C % n_head == 0
    tT = _token_tile(T)
    grid = (pl.cdiv(T, tT),)

    pe = params["pe_t"][:, :T]            # (C, T); no B-times tiling

    kernel = functools.partial(mha_conv_kernel, n_head=n_head)
    resident = lambda i: (0, 0)           # constant block index -> never re-DMA'd

    return pl.pallas_call(
        kernel,
        out_shape=jax.ShapeDtypeStruct((B, C, T), jnp.float32),
        grid=grid,
        in_specs=[
            pl.BlockSpec((B, C, tT), lambda i: (0, 0, i)),   # x, lane-dense in T
            pl.BlockSpec((C, tT), lambda i: (0, i)),         # positional encoding
            pl.BlockSpec((C, 1), resident),                  # ln1 weight
            pl.BlockSpec((C, 1), resident),                  # ln1 bias
            pl.BlockSpec((3 * C, C), resident),              # in-proj weight
            pl.BlockSpec((3 * C, 1), resident),              # in-proj bias
            pl.BlockSpec((C, C), resident),                  # out-proj weight
            pl.BlockSpec((C, 1), resident),                  # out-proj bias
            pl.BlockSpec((C, 1), resident),                  # ln2 weight
            pl.BlockSpec((C, 1), resident),                  # ln2 bias
        ],
        out_specs=pl.BlockSpec((B, C, tT), lambda i: (0, 0, i)),  # lane-dense store
        compiler_params=pltpu.CompilerParams(
            # Token tiles are independent -> shard the grid across v7x's 2 TCs.
            dimension_semantics=("parallel",),
            # Tiles are a few hundred KiB; 32 MiB keeps us well under v7x's VMEM.
            vmem_limit_bytes=32 * 1024 * 1024,
        ),
    )(x, pe, params["ln1_w"], params["ln1_b"], params["w_in"], params["b_in"],
      params["w_out"], params["b_out"], params["ln2_w"], params["ln2_b"])


# ------------------------------ params / reference ----------------------------


def positional_encoding(max_length, channels):
    position = jnp.arange(max_length, dtype=jnp.float32)[:, None]
    div_term = jnp.exp(jnp.arange(0, channels, 2, dtype=jnp.float32)
                       * (-(math.log(10000.0) / channels)))
    pe = jnp.zeros((max_length, channels), dtype=jnp.float32)
    pe = pe.at[:, 0::2].set(jnp.sin(position * div_term))
    pe = pe.at[:, 1::2].set(jnp.cos(position * div_term))
    return pe                                            # (max_length, C)


def init_raw_params(key, in_channels, max_length=10000):
    """Parameters in the PyTorch module's native conventions."""
    C = in_channels
    ks = jax.random.split(key, 8)
    return {
        "in_proj_weight": jax.random.normal(ks[0], (3 * C, C), jnp.float32) / math.sqrt(C),
        "in_proj_bias": 0.02 * jax.random.normal(ks[1], (3 * C,), jnp.float32),
        "out_proj_weight": jax.random.normal(ks[2], (C, C), jnp.float32) / math.sqrt(C),
        "out_proj_bias": 0.02 * jax.random.normal(ks[3], (C,), jnp.float32),
        "ln1_w": 1.0 + 0.1 * jax.random.normal(ks[4], (C,), jnp.float32),
        "ln1_b": 0.1 * jax.random.normal(ks[5], (C,), jnp.float32),
        "ln2_w": 1.0 + 0.1 * jax.random.normal(ks[6], (C,), jnp.float32),
        "ln2_b": 0.1 * jax.random.normal(ks[7], (C,), jnp.float32),
        "pe": positional_encoding(max_length, C),         # (max_length, C)
    }


def prepare_kernel_params(raw, n_head):
    """One-time transform to kernel layout: column vectors for lane-broadcast
    params, pe transposed to (C, max_length), and the 1/sqrt(dh) attention
    scale folded into the Q rows of the in-projection (a reparametrization of
    the identical function)."""
    C = raw["ln1_w"].shape[0]
    scale = 1.0 / math.sqrt(C // n_head)
    w_in = raw["in_proj_weight"].at[:C].multiply(scale)
    b_in = raw["in_proj_bias"].at[:C].multiply(scale)
    col = lambda v: v[:, None]
    return {
        "w_in": w_in,                       # (3C, C), applied as W @ y_columns
        "b_in": col(b_in),                  # (3C, 1)
        "w_out": raw["out_proj_weight"],    # (C, C)
        "b_out": col(raw["out_proj_bias"]),
        "ln1_w": col(raw["ln1_w"]), "ln1_b": col(raw["ln1_b"]),
        "ln2_w": col(raw["ln2_w"]), "ln2_b": col(raw["ln2_b"]),
        "pe_t": jnp.transpose(raw["pe"]),   # (C, max_length)
    }


def mha_conv_reference(x, raw, n_head):
    """Pure-JAX eval-mode forward mirroring the PyTorch module (including
    MultiheadAttention's batch_first=False (L, N, E) convention: with input
    (B, T, C) attention mixes over B, batched over T and heads)."""
    B, C, T = x.shape
    H = n_head
    dh = C // H

    def ln(a, w, b):
        mu = jnp.mean(a, axis=-1, keepdims=True)
        var = jnp.mean(jnp.square(a - mu), axis=-1, keepdims=True)
        return (a - mu) * lax.rsqrt(var + EPS) * w + b

    xt = jnp.transpose(x, (0, 2, 1))                            # (B, T, C)
    y = ln(xt, raw["ln1_w"], raw["ln1_b"]) + raw["pe"][:T][None]
    qkv = jnp.einsum("btc,ec->bte", y, raw["in_proj_weight"],
                     precision=_PREC) + raw["in_proj_bias"]
    q, k, v = jnp.split(qkv, 3, axis=-1)                        # (B, T, C); B == L
    q = q / math.sqrt(dh)

    def heads(a):                                               # -> (T, H, B, dh)
        return a.reshape(B, T, H, dh).transpose(1, 2, 0, 3)

    qh, kh, vh = heads(q), heads(k), heads(v)
    s = jnp.einsum("thid,thjd->thij", qh, kh, precision=_PREC)
    p = jax.nn.softmax(s, axis=-1)
    ctx = jnp.einsum("thij,thjd->thid", p, vh, precision=_PREC) # (T, H, B, dh)
    a = ctx.transpose(2, 0, 1, 3).reshape(B, T, C)
    z = jnp.einsum("btc,oc->bto", a, raw["out_proj_weight"],
                   precision=_PREC) + raw["out_proj_bias"]
    z = z + z                                                   # eval-mode dropout == identity
    return jnp.transpose(ln(z, raw["ln2_w"], raw["ln2_b"]), (0, 2, 1))


if __name__ == "__main__":
    B, C, T, H = 2, 32, 8, 4            # in_channels=32, n_head=4, seq len T=8
    key = jax.random.PRNGKey(0)
    kx, kp = jax.random.split(key)
    x = jax.random.normal(kx, (B, C, T), jnp.float32)

    raw = init_raw_params(kp, C)
    kparams = prepare_kernel_params(raw, H)

    fwd = jax.jit(mha_conv_forward, static_argnames=("n_head",))
    out = jax.block_until_ready(fwd(x, kparams, n_head=H))
    assert out.shape == (B, C, T)

    ref = mha_conv_reference(x, raw, H)
    # All math (matmuls at HIGHEST precision, exact softmax divide) is fp32;
    # expected max error ~1e-5. Tolerance 2e-3 leaves a wide safety margin.
    if not bool(jnp.allclose(out, ref, atol=2e-3, rtol=2e-3)):
        err = float(jnp.max(jnp.abs(out - ref)))
        raise AssertionError(f"Pallas output does not match reference (max |err| = {err})")
    print("KERNEL_OK")
</pallas_src>

<mosaic_0001>
module attributes {stable_mosaic.version = 11 : i64} {
  func.func @mha_conv_kernel(%arg0: i32, %arg1: memref<2x32x8xf32, #tpu.memory_space<vmem>>, %arg2: memref<32x8xf32, #tpu.memory_space<vmem>>, %arg3: memref<32x1xf32, #tpu.memory_space<vmem>>, %arg4: memref<32x1xf32, #tpu.memory_space<vmem>>, %arg5: memref<96x32xf32, #tpu.memory_space<vmem>>, %arg6: memref<96x1xf32, #tpu.memory_space<vmem>>, %arg7: memref<32x32xf32, #tpu.memory_space<vmem>>, %arg8: memref<32x1xf32, #tpu.memory_space<vmem>>, %arg9: memref<32x1xf32, #tpu.memory_space<vmem>>, %arg10: memref<32x1xf32, #tpu.memory_space<vmem>>, %arg11: memref<2x32x8xf32, #tpu.memory_space<vmem>>) attributes {dimension_semantics = [#tpu.dimension_semantics<parallel>], iteration_bounds = array<i64: 1>, scalar_prefetch = 0 : i64, scratch_operands = 0 : i64, tpu.core_type = #tpu.core_type<tc>, window_params = [{transform_indices = @transform_0, window_bounds = array<i64: 2, 32, 8>}, {transform_indices = @transform_1, window_bounds = array<i64: 32, 8>}, {pipeline_mode = #tpu.pipeline_mode<synchronous>, transform_indices = @transform_2, window_bounds = array<i64: 32, 1>}, {pipeline_mode = #tpu.pipeline_mode<synchronous>, transform_indices = @transform_3, window_bounds = array<i64: 32, 1>}, {pipeline_mode = #tpu.pipeline_mode<synchronous>, transform_indices = @transform_4, window_bounds = array<i64: 96, 32>}, {pipeline_mode = #tpu.pipeline_mode<synchronous>, transform_indices = @transform_5, window_bounds = array<i64: 96, 1>}, {pipeline_mode = #tpu.pipeline_mode<synchronous>, transform_indices = @transform_6, window_bounds = array<i64: 32, 32>}, {pipeline_mode = #tpu.pipeline_mode<synchronous>, transform_indices = @transform_7, window_bounds = array<i64: 32, 1>}, {pipeline_mode = #tpu.pipeline_mode<synchronous>, transform_indices = @transform_8, window_bounds = array<i64: 32, 1>}, {pipeline_mode = #tpu.pipeline_mode<synchronous>, transform_indices = @transform_9, window_bounds = array<i64: 32, 1>}, {transform_indices = @transform_10, window_bounds = array<i64: 2, 32, 8>}]} {
    %c0 = arith.constant 0 : index
    %c0_0 = arith.constant 0 : index
    %0 = vector.load %arg2[%c0, %c0_0] : memref<32x8xf32, #tpu.memory_space<vmem>>, vector<32x8xf32>
    %c0_1 = arith.constant 0 : index
    %c0_2 = arith.constant 0 : index
    %1 = vector.load %arg3[%c0_1, %c0_2] : memref<32x1xf32, #tpu.memory_space<vmem>>, vector<32x1xf32>
    %c0_3 = arith.constant 0 : index
    %c0_4 = arith.constant 0 : index
    %2 = vector.load %arg4[%c0_3, %c0_4] : memref<32x1xf32, #tpu.memory_space<vmem>>, vector<32x1xf32>
    %c0_5 = arith.constant 0 : index
    %c0_6 = arith.constant 0 : index
    %3 = vector.load %arg9[%c0_5, %c0_6] : memref<32x1xf32, #tpu.memory_space<vmem>>, vector<32x1xf32>
    %c0_7 = arith.constant 0 : index
    %c0_8 = arith.constant 0 : index
    %4 = vector.load %arg10[%c0_7, %c0_8] : memref<32x1xf32, #tpu.memory_space<vmem>>, vector<32x1xf32>
    %c0_9 = arith.constant 0 : index
    %c0_10 = arith.constant 0 : index
    %5 = vector.load %arg5[%c0_9, %c0_10] : memref<96x32xf32, #tpu.memory_space<vmem>>, vector<96x32xf32>
    %c0_11 = arith.constant 0 : index
    %c0_12 = arith.constant 0 : index
    %6 = vector.load %arg6[%c0_11, %c0_12] : memref<96x1xf32, #tpu.memory_space<vmem>>, vector<96x1xf32>
    %c0_13 = arith.constant 0 : index
    %c0_14 = arith.constant 0 : index
    %7 = vector.load %arg7[%c0_13, %c0_14] : memref<32x32xf32, #tpu.memory_space<vmem>>, vector<32x32xf32>
    %c0_15 = arith.constant 0 : index
    %c0_16 = arith.constant 0 : index
    %8 = vector.load %arg8[%c0_15, %c0_16] : memref<32x1xf32, #tpu.memory_space<vmem>>, vector<32x1xf32>
    %c0_17 = arith.constant 0 : index
    %c0_18 = arith.constant 0 : index
    %c0_19 = arith.constant 0 : index
    %9 = vector.load %arg1[%c0_17, %c0_18, %c0_19] : memref<2x32x8xf32, #tpu.memory_space<vmem>>, vector<1x32x8xf32>
    %10 = vector.shape_cast %9 : vector<1x32x8xf32> to vector<32x8xf32>
    %cst = arith.constant dense<0.000000e+00> : vector<8xf32>
    %11 = vector.multi_reduction <add>, %10, %cst [0] : vector<32x8xf32> to vector<8xf32>
    %12 = vector.shape_cast %11 : vector<8xf32> to vector<1x8xf32>
    %cst_20 = arith.constant 3.200000e+01 : f32
    %13 = vector.broadcast %cst_20 : f32 to vector<1x8xf32>
    %14 = arith.divf %12, %13 : vector<1x8xf32>
    %15 = vector.broadcast %14 : vector<1x8xf32> to vector<32x8xf32>
    %16 = arith.subf %10, %15 : vector<32x8xf32>
    %17 = arith.mulf %16, %16 : vector<32x8xf32>
    %cst_21 = arith.constant dense<0.000000e+00> : vector<8xf32>
    %18 = vector.multi_reduction <add>, %17, %cst_21 [0] : vector<32x8xf32> to vector<8xf32>
    %19 = vector.shape_cast %18 : vector<8xf32> to vector<1x8xf32>
    %cst_22 = arith.constant 3.200000e+01 : f32
    %20 = vector.broadcast %cst_22 : f32 to vector<1x8xf32>
    %21 = arith.divf %19, %20 : vector<1x8xf32>
    %22 = vector.broadcast %14 : vector<1x8xf32> to vector<32x8xf32>
    %23 = arith.subf %10, %22 : vector<32x8xf32>
    %cst_23 = arith.constant 9.99999974E-6 : f32
    %24 = vector.broadcast %cst_23 : f32 to vector<1x8xf32>
    %25 = arith.addf %21, %24 : vector<1x8xf32>
    %26 = math.rsqrt %25 : vector<1x8xf32>
    %27 = vector.broadcast %26 : vector<1x8xf32> to vector<32x8xf32>
    %28 = arith.mulf %23, %27 : vector<32x8xf32>
    %29 = vector.broadcast %1 : vector<32x1xf32> to vector<32x8xf32>
    %30 = arith.mulf %28, %29 : vector<32x8xf32>
    %31 = vector.broadcast %2 : vector<32x1xf32> to vector<32x8xf32>
    %32 = arith.addf %30, %31 : vector<32x8xf32>
    %33 = arith.addf %32, %0 : vector<32x8xf32>
    %cst_24 = arith.constant dense<0.000000e+00> : vector<96x8xf32>
    %34 = tpu.matmul %5, %33, %cst_24 {dimension_numbers = #tpu.dot_dimension_numbers<[1], [0], [0], [1], [0, 0, 1, 1], [], []>, precision = #tpu.contract_precision<fp32>} : vector<96x32xf32>, vector<32x8xf32>, vector<96x8xf32> -> vector<96x8xf32>
    %35 = vector.broadcast %6 : vector<96x1xf32> to vector<96x8xf32>
    %36 = arith.addf %34, %35 : vector<96x8xf32>
    %37 = vector.extract_strided_slice %36 {offsets = [0, 0], sizes = [8, 8], strides = [1, 1]} : vector<96x8xf32> to vector<8x8xf32>
    %38 = vector.extract_strided_slice %36 {offsets = [8, 0], sizes = [8, 8], strides = [1, 1]} : vector<96x8xf32> to vector<8x8xf32>
    %39 = vector.extract_strided_slice %36 {offsets = [16, 0], sizes = [8, 8], strides = [1, 1]} : vector<96x8xf32> to vector<8x8xf32>
    %40 = vector.extract_strided_slice %36 {offsets = [24, 0], sizes = [8, 8], strides = [1, 1]} : vector<96x8xf32> to vector<8x8xf32>
    %41 = vector.extract_strided_slice %36 {offsets = [32, 0], sizes = [8, 8], strides = [1, 1]} : vector<96x8xf32> to vector<8x8xf32>
    %42 = vector.extract_strided_slice %36 {offsets = [40, 0], sizes = [8, 8], strides = [1, 1]} : vector<96x8xf32> to vector<8x8xf32>
    %43 = vector.extract_strided_slice %36 {offsets = [48, 0], sizes = [8, 8], strides = [1, 1]} : vector<96x8xf32> to vector<8x8xf32>
    %44 = vector.extract_strided_slice %36 {offsets = [56, 0], sizes = [8, 8], strides = [1, 1]} : vector<96x8xf32> to vector<8x8xf32>
    %45 = vector.extract_strided_slice %36 {offsets = [64, 0], sizes = [8, 8], strides = [1, 1]} : vector<96x8xf32> to vector<8x8xf32>
    %46 = vector.extract_strided_slice %36 {offsets = [72, 0], sizes = [8, 8], strides = [1, 1]} : vector<96x8xf32> to vector<8x8xf32>
    %47 = vector.extract_strided_slice %36 {offsets = [80, 0], sizes = [8, 8], strides = [1, 1]} : vector<96x8xf32> to vector<8x8xf32>
    %48 = vector.extract_strided_slice %36 {offsets = [88, 0], sizes = [8, 8], strides = [1, 1]} : vector<96x8xf32> to vector<8x8xf32>
    %c1 = arith.constant 1 : index
    %c0_25 = arith.constant 0 : index
    %c0_26 = arith.constant 0 : index
    %49 = vector.load %arg1[%c1, %c0_25, %c0_26] : memref<2x32x8xf32, #tpu.memory_space<vmem>>, vector<1x32x8xf32>
    %50 = vector.shape_cast %49 : vector<1x32x8xf32> to vector<32x8xf32>
    %cst_27 = arith.constant dense<0.000000e+00> : vector<8xf32>
    %51 = vector.multi_reduction <add>, %50, %cst_27 [0] : vector<32x8xf32> to vector<8xf32>
    %52 = vector.shape_cast %51 : vector<8xf32> to vector<1x8xf32>
    %cst_28 = arith.constant 3.200000e+01 : f32
    %53 = vector.broadcast %cst_28 : f32 to vector<1x8xf32>
    %54 = arith.divf %52, %53 : vector<1x8xf32>
    %55 = vector.broadcast %54 : vector<1x8xf32> to vector<32x8xf32>
    %56 = arith.subf %50, %55 : vector<32x8xf32>
    %57 = arith.mulf %56, %56 : vector<32x8xf32>
    %cst_29 = arith.constant dense<0.000000e+00> : vector<8xf32>
    %58 = vector.multi_reduction <add>, %57, %cst_29 [0] : vector<32x8xf32> to vector<8xf32>
    %59 = vector.shape_cast %58 : vector<8xf32> to vector<1x8xf32>
    %cst_30 = arith.constant 3.200000e+01 : f32
    %60 = vector.broadcast %cst_30 : f32 to vector<1x8xf32>
    %61 = arith.divf %59, %60 : vector<1x8xf32>
    %62 = vector.broadcast %54 : vector<1x8xf32> to vector<32x8xf32>
    %63 = arith.subf %50, %62 : vector<32x8xf32>
    %cst_31 = arith.constant 9.99999974E-6 : f32
    %64 = vector.broadcast %cst_31 : f32 to vector<1x8xf32>
    %65 = arith.addf %61, %64 : vector<1x8xf32>
    %66 = math.rsqrt %65 : vector<1x8xf32>
    %67 = vector.broadcast %66 : vector<1x8xf32> to vector<32x8xf32>
    %68 = arith.mulf %63, %67 : vector<32x8xf32>
    %69 = vector.broadcast %1 : vector<32x1xf32> to vector<32x8xf32>
    %70 = arith.mulf %68, %69 : vector<32x8xf32>
    %71 = vector.broadcast %2 : vector<32x1xf32> to vector<32x8xf32>
    %72 = arith.addf %70, %71 : vector<32x8xf32>
    %73 = arith.addf %72, %0 : vector<32x8xf32>
    %cst_32 = arith.constant dense<0.000000e+00> : vector<96x8xf32>
    %74 = tpu.matmul %5, %73, %cst_32 {dimension_numbers = #tpu.dot_dimension_numbers<[1], [0], [0], [1], [0, 0, 1, 1], [], []>, precision = #tpu.contract_precision<fp32>} : vector<96x32xf32>, vector<32x8xf32>, vector<96x8xf32> -> vector<96x8xf32>
    %75 = vector.broadcast %6 : vector<96x1xf32> to vector<96x8xf32>
    %76 = arith.addf %74, %75 : vector<96x8xf32>
    %77 = vector.extract_strided_slice %76 {offsets = [0, 0], sizes = [8, 8], strides = [1, 1]} : vector<96x8xf32> to vector<8x8xf32>
    %78 = vector.extract_strided_slice %76 {offsets = [8, 0], sizes = [8, 8], strides = [1, 1]} : vector<96x8xf32> to vector<8x8xf32>
    %79 = vector.extract_strided_slice %76 {offsets = [16, 0], sizes = [8, 8], strides = [1, 1]} : vector<96x8xf32> to vector<8x8xf32>
    %80 = vector.extract_strided_slice %76 {offsets = [24, 0], sizes = [8, 8], strides = [1, 1]} : vector<96x8xf32> to vector<8x8xf32>
    %81 = vector.extract_strided_slice %76 {offsets = [32, 0], sizes = [8, 8], strides = [1, 1]} : vector<96x8xf32> to vector<8x8xf32>
    %82 = vector.extract_strided_slice %76 {offsets = [40, 0], sizes = [8, 8], strides = [1, 1]} : vector<96x8xf32> to vector<8x8xf32>
    %83 = vector.extract_strided_slice %76 {offsets = [48, 0], sizes = [8, 8], strides = [1, 1]} : vector<96x8xf32> to vector<8x8xf32>
    %84 = vector.extract_strided_slice %76 {offsets = [56, 0], sizes = [8, 8], strides = [1, 1]} : vector<96x8xf32> to vector<8x8xf32>
    %85 = vector.extract_strided_slice %76 {offsets = [64, 0], sizes = [8, 8], strides = [1, 1]} : vector<96x8xf32> to vector<8x8xf32>
    %86 = vector.extract_strided_slice %76 {offsets = [72, 0], sizes = [8, 8], strides = [1, 1]} : vector<96x8xf32> to vector<8x8xf32>
    %87 = vector.extract_strided_slice %76 {offsets = [80, 0], sizes = [8, 8], strides = [1, 1]} : vector<96x8xf32> to vector<8x8xf32>
    %88 = vector.extract_strided_slice %76 {offsets = [88, 0], sizes = [8, 8], strides = [1, 1]} : vector<96x8xf32> to vector<8x8xf32>
    %89 = arith.mulf %37, %41 : vector<8x8xf32>
    %cst_33 = arith.constant dense<0.000000e+00> : vector<8xf32>
    %90 = vector.multi_reduction <add>, %89, %cst_33 [0] : vector<8x8xf32> to vector<8xf32>
    %91 = vector.shape_cast %90 : vector<8xf32> to vector<1x8xf32>
    %92 = arith.mulf %37, %81 : vector<8x8xf32>
    %cst_34 = arith.constant dense<0.000000e+00> : vector<8xf32>
    %93 = vector.multi_reduction <add>, %92, %cst_34 [0] : vector<8x8xf32> to vector<8xf32>
    %94 = vector.shape_cast %93 : vector<8xf32> to vector<1x8xf32>
    %95 = arith.maximumf %91, %94 : vector<1x8xf32>
    %96 = arith.subf %91, %95 : vector<1x8xf32>
    %97 = math.exp %96 : vector<1x8xf32>
    %98 = arith.subf %94, %95 : vector<1x8xf32>
    %99 = math.exp %98 : vector<1x8xf32>
    %100 = arith.addf %97, %99 : vector<1x8xf32>
    %cst_35 = arith.constant 1.000000e+00 : f32
    %101 = vector.broadcast %cst_35 : f32 to vector<1x8xf32>
    %102 = arith.divf %101, %100 : vector<1x8xf32>
    %103 = arith.mulf %97, %102 : vector<1x8xf32>
    %104 = vector.broadcast %103 : vector<1x8xf32> to vector<8x8xf32>
    %105 = arith.mulf %104, %45 : vector<8x8xf32>
    %106 = arith.mulf %99, %102 : vector<1x8xf32>
    %107 = vector.broadcast %106 : vector<1x8xf32> to vector<8x8xf32>
    %108 = arith.mulf %107, %85 : vector<8x8xf32>
    %109 = arith.addf %105, %108 : vector<8x8xf32>
    %110 = arith.mulf %38, %42 : vector<8x8xf32>
    %cst_36 = arith.constant dense<0.000000e+00> : vector<8xf32>
    %111 = vector.multi_reduction <add>, %110, %cst_36 [0] : vector<8x8xf32> to vector<8xf32>
    %112 = vector.shape_cast %111 : vector<8xf32> to vector<1x8xf32>
    %113 = arith.mulf %38, %82 : vector<8x8xf32>
    %cst_37 = arith.constant dense<0.000000e+00> : vector<8xf32>
    %114 = vector.multi_reduction <add>, %113, %cst_37 [0] : vector<8x8xf32> to vector<8xf32>
    %115 = vector.shape_cast %114 : vector<8xf32> to vector<1x8xf32>
    %116 = arith.maximumf %112, %115 : vector<1x8xf32>
    %117 = arith.subf %112, %116 : vector<1x8xf32>
    %118 = math.exp %117 : vector<1x8xf32>
    %119 = arith.subf %115, %116 : vector<1x8xf32>
    %120 = math.exp %119 : vector<1x8xf32>
    %121 = arith.addf %118, %120 : vector<1x8xf32>
    %cst_38 = arith.constant 1.000000e+00 : f32
    %122 = vector.broadcast %cst_38 : f32 to vector<1x8xf32>
    %123 = arith.divf %122, %121 : vector<1x8xf32>
    %124 = arith.mulf %118, %123 : vector<1x8xf32>
    %125 = vector.broadcast %124 : vector<1x8xf32> to vector<8x8xf32>
    %126 = arith.mulf %125, %46 : vector<8x8xf32>
    %127 = arith.mulf %120, %123 : vector<1x8xf32>
    %128 = vector.broadcast %127 : vector<1x8xf32> to vector<8x8xf32>
    %129 = arith.mulf %128, %86 : vector<8x8xf32>
    %130 = arith.addf %126, %129 : vector<8x8xf32>
    %131 = arith.mulf %39, %43 : vector<8x8xf32>
    %cst_39 = arith.constant dense<0.000000e+00> : vector<8xf32>
    %132 = vector.multi_reduction <add>, %131, %cst_39 [0] : vector<8x8xf32> to vector<8xf32>
    %133 = vector.shape_cast %132 : vector<8xf32> to vector<1x8xf32>
    %134 = arith.mulf %39, %83 : vector<8x8xf32>
    %cst_40 = arith.constant dense<0.000000e+00> : vector<8xf32>
    %135 = vector.multi_reduction <add>, %134, %cst_40 [0] : vector<8x8xf32> to vector<8xf32>
    %136 = vector.shape_cast %135 : vector<8xf32> to vector<1x8xf32>
    %137 = arith.maximumf %133, %136 : vector<1x8xf32>
    %138 = arith.subf %133, %137 : vector<1x8xf32>
    %139 = math.exp %138 : vector<1x8xf32>
    %140 = arith.subf %136, %137 : vector<1x8xf32>
    %141 = math.exp %140 : vector<1x8xf32>
    %142 = arith.addf %139, %141 : vector<1x8xf32>
    %cst_41 = arith.constant 1.000000e+00 : f32
    %143 = vector.broadcast %cst_41 : f32 to vector<1x8xf32>
    %144 = arith.divf %143, %142 : vector<1x8xf32>
    %145 = arith.mulf %139, %144 : vector<1x8xf32>
    %146 = vector.broadcast %145 : vector<1x8xf32> to vector<8x8xf32>
    %147 = arith.mulf %146, %47 : vector<8x8xf32>
    %148 = arith.mulf %141, %144 : vector<1x8xf32>
    %149 = vector.broadcast %148 : vector<1x8xf32> to vector<8x8xf32>
    %150 = arith.mulf %149, %87 : vector<8x8xf32>
    %151 = arith.addf %147, %150 : vector<8x8xf32>
    %152 = arith.mulf %40, %44 : vector<8x8xf32>
    %cst_42 = arith.constant dense<0.000000e+00> : vector<8xf32>
    %153 = vector.multi_reduction <add>, %152, %cst_42 [0] : vector<8x8xf32> to vector<8xf32>
    %154 = vector.shape_cast %153 : vector<8xf32> to vector<1x8xf32>
    %155 = arith.mulf %40, %84 : vector<8x8xf32>
    %cst_43 = arith.constant dense<0.000000e+00> : vector<8xf32>
    %156 = vector.multi_reduction <add>, %155, %cst_43 [0] : vector<8x8xf32> to vector<8xf32>
    %157 = vector.shape_cast %156 : vector<8xf32> to vector<1x8xf32>
    %158 = arith.maximumf %154, %157 : vector<1x8xf32>
    %159 = arith.subf %154, %158 : vector<1x8xf32>
    %160 = math.exp %159 : vector<1x8xf32>
    %161 = arith.subf %157, %158 : vector<1x8xf32>
    %162 = math.exp %161 : vector<1x8xf32>
    %163 = arith.addf %160, %162 : vector<1x8xf32>
    %cst_44 = arith.constant 1.000000e+00 : f32
    %164 = vector.broadcast %cst_44 : f32 to vector<1x8xf32>
    %165 = arith.divf %164, %163 : vector<1x8xf32>
    %166 = arith.mulf %160, %165 : vector<1x8xf32>
    %167 = vector.broadcast %166 : vector<1x8xf32> to vector<8x8xf32>
    %168 = arith.mulf %167, %48 : vector<8x8xf32>
    %169 = arith.mulf %162, %165 : vector<1x8xf32>
    %170 = vector.broadcast %169 : vector<1x8xf32> to vector<8x8xf32>
    %171 = arith.mulf %170, %88 : vector<8x8xf32>
    %172 = arith.addf %168, %171 : vector<8x8xf32>
    %173 = tpu.concatenate %109, %130, %151, %172 in 0 : vector<8x8xf32>, vector<8x8xf32>, vector<8x8xf32>, vector<8x8xf32> -> vector<32x8xf32>
    %cst_45 = arith.constant dense<0.000000e+00> : vector<32x8xf32>
    %174 = tpu.matmul %7, %173, %cst_45 {dimension_numbers = #tpu.dot_dimension_numbers<[1], [0], [0], [1], [0, 0, 1, 1], [], []>, precision = #tpu.contract_precision<fp32>} : vector<32x32xf32>, vector<32x8xf32>, vector<32x8xf32> -> vector<32x8xf32>
    %175 = vector.broadcast %8 : vector<32x1xf32> to vector<32x8xf32>
    %176 = arith.addf %174, %175 : vector<32x8xf32>
    %177 = arith.addf %176, %176 : vector<32x8xf32>
    %cst_46 = arith.constant dense<0.000000e+00> : vector<8xf32>
    %178 = vector.multi_reduction <add>, %177, %cst_46 [0] : vector<32x8xf32> to vector<8xf32>
    %179 = vector.shape_cast %178 : vector<8xf32> to vector<1x8xf32>
    %cst_47 = arith.constant 3.200000e+01 : f32
    %180 = vector.broadcast %cst_47 : f32 to vector<1x8xf32>
    %181 = arith.divf %179, %180 : vector<1x8xf32>
    %182 = vector.broadcast %181 : vector<1x8xf32> to vector<32x8xf32>
    %183 = arith.subf %177, %182 : vector<32x8xf32>
    %184 = arith.mulf %183, %183 : vector<32x8xf32>
    %cst_48 = arith.constant dense<0.000000e+00> : vector<8xf32>
    %185 = vector.multi_reduction <add>, %184, %cst_48 [0] : vector<32x8xf32> to vector<8xf32>
    %186 = vector.shape_cast %185 : vector<8xf32> to vector<1x8xf32>
    %cst_49 = arith.constant 3.200000e+01 : f32
    %187 = vector.broadcast %cst_49 : f32 to vector<1x8xf32>
    %188 = arith.divf %186, %187 : vector<1x8xf32>
    %189 = vector.broadcast %181 : vector<1x8xf32> to vector<32x8xf32>
    %190 = arith.subf %177, %189 : vector<32x8xf32>
    %cst_50 = arith.constant 9.99999974E-6 : f32
    %191 = vector.broadcast %cst_50 : f32 to vector<1x8xf32>
    %192 = arith.addf %188, %191 : vector<1x8xf32>
    %193 = math.rsqrt %192 : vector<1x8xf32>
    %194 = vector.broadcast %193 : vector<1x8xf32> to vector<32x8xf32>
    %195 = arith.mulf %190, %194 : vector<32x8xf32>
    %196 = vector.broadcast %3 : vector<32x1xf32> to vector<32x8xf32>
    %197 = arith.mulf %195, %196 : vector<32x8xf32>
    %198 = vector.broadcast %4 : vector<32x1xf32> to vector<32x8xf32>
    %199 = arith.addf %197, %198 : vector<32x8xf32>
    %c0_51 = arith.constant 0 : index
    %c0_52 = arith.constant 0 : index
    %c0_53 = arith.constant 0 : index
    %200 = vector.load %arg11[%c0_51, %c0_52, %c0_53] : memref<2x32x8xf32, #tpu.memory_space<vmem>>, vector<1x32x8xf32>
    %201 = vector.shape_cast %200 : vector<1x32x8xf32> to vector<32x8xf32>
    %202 = vector.shape_cast %199 : vector<32x8xf32> to vector<1x32x8xf32>
    tpu.vector_store %arg11[%c0_51, %c0_52, %c0_53], %202 {strides = array<i32>} : memref<2x32x8xf32, #tpu.memory_space<vmem>>, vector<1x32x8xf32>,
    %203 = arith.mulf %77, %41 : vector<8x8xf32>
    %cst_54 = arith.constant dense<0.000000e+00> : vector<8xf32>
    %204 = vector.multi_reduction <add>, %203, %cst_54 [0] : vector<8x8xf32> to vector<8xf32>
    %205 = vector.shape_cast %204 : vector<8xf32> to vector<1x8xf32>
    %206 = arith.mulf %77, %81 : vector<8x8xf32>
    %cst_55 = arith.constant dense<0.000000e+00> : vector<8xf32>
    %207 = vector.multi_reduction <add>, %206, %cst_55 [0] : vector<8x8xf32> to vector<8xf32>
    %208 = vector.shape_cast %207 : vector<8xf32> to vector<1x8xf32>
    %209 = arith.maximumf %205, %208 : vector<1x8xf32>
    %210 = arith.subf %205, %209 : vector<1x8xf32>
    %211 = math.exp %210 : vector<1x8xf32>
    %212 = arith.subf %208, %209 : vector<1x8xf32>
    %213 = math.exp %212 : vector<1x8xf32>
    %214 = arith.addf %211, %213 : vector<1x8xf32>
    %cst_56 = arith.constant 1.000000e+00 : f32
    %215 = vector.broadcast %cst_56 : f32 to vector<1x8xf32>
    %216 = arith.divf %215, %214 : vector<1x8xf32>
    %217 = arith.mulf %211, %216 : vector<1x8xf32>
    %218 = vector.broadcast %217 : vector<1x8xf32> to vector<8x8xf32>
    %219 = arith.mulf %218, %45 : vector<8x8xf32>
    %220 = arith.mulf %213, %216 : vector<1x8xf32>
    %221 = vector.broadcast %220 : vector<1x8xf32> to vector<8x8xf32>
    %222 = arith.mulf %221, %85 : vector<8x8xf32>
    %223 = arith.addf %219, %222 : vector<8x8xf32>
    %224 = arith.mulf %78, %42 : vector<8x8xf32>
    %cst_57 = arith.constant dense<0.000000e+00> : vector<8xf32>
    %225 = vector.multi_reduction <add>, %224, %cst_57 [0] : vector<8x8xf32> to vector<8xf32>
    %226 = vector.shape_cast %225 : vector<8xf32> to vector<1x8xf32>
    %227 = arith.mulf %78, %82 : vector<8x8xf32>
    %cst_58 = arith.constant dense<0.000000e+00> : vector<8xf32>
    %228 = vector.multi_reduction <add>, %227, %cst_58 [0] : vector<8x8xf32> to vector<8xf32>
    %229 = vector.shape_cast %228 : vector<8xf32> to vector<1x8xf32>
    %230 = arith.maximumf %226, %229 : vector<1x8xf32>
    %231 = arith.subf %226, %230 : vector<1x8xf32>
    %232 = math.exp %231 : vector<1x8xf32>
    %233 = arith.subf %229, %230 : vector<1x8xf32>
    %234 = math.exp %233 : vector<1x8xf32>
    %235 = arith.addf %232, %234 : vector<1x8xf32>
    %cst_59 = arith.constant 1.000000e+00 : f32
    %236 = vector.broadcast %cst_59 : f32 to vector<1x8xf32>
    %237 = arith.divf %236, %235 : vector<1x8xf32>
    %238 = arith.mulf %232, %237 : vector<1x8xf32>
    %239 = vector.broadcast %238 : vector<1x8xf32> to vector<8x8xf32>
    %240 = arith.mulf %239, %46 : vector<8x8xf32>
    %241 = arith.mulf %234, %237 : vector<1x8xf32>
    %242 = vector.broadcast %241 : vector<1x8xf32> to vector<8x8xf32>
    %243 = arith.mulf %242, %86 : vector<8x8xf32>
    %244 = arith.addf %240, %243 : vector<8x8xf32>
    %245 = arith.mulf %79, %43 : vector<8x8xf32>
    %cst_60 = arith.constant dense<0.000000e+00> : vector<8xf32>
    %246 = vector.multi_reduction <add>, %245, %cst_60 [0] : vector<8x8xf32> to vector<8xf32>
    %247 = vector.shape_cast %246 : vector<8xf32> to vector<1x8xf32>
    %248 = arith.mulf %79, %83 : vector<8x8xf32>
    %cst_61 = arith.constant dense<0.000000e+00> : vector<8xf32>
    %249 = vector.multi_reduction <add>, %248, %cst_61 [0] : vector<8x8xf32> to vector<8xf32>
    %250 = vector.shape_cast %249 : vector<8xf32> to vector<1x8xf32>
    %251 = arith.maximumf %247, %250 : vector<1x8xf32>
    %252 = arith.subf %247, %251 : vector<1x8xf32>
    %253 = math.exp %252 : vector<1x8xf32>
    %254 = arith.subf %250, %251 : vector<1x8xf32>
    %255 = math.exp %254 : vector<1x8xf32>
    %256 = arith.addf %253, %255 : vector<1x8xf32>
    %cst_62 = arith.constant 1.000000e+00 : f32
    %257 = vector.broadcast %cst_62 : f32 to vector<1x8xf32>
    %258 = arith.divf %257, %256 : vector<1x8xf32>
    %259 = arith.mulf %253, %258 : vector<1x8xf32>
    %260 = vector.broadcast %259 : vector<1x8xf32> to vector<8x8xf32>
    %261 = arith.mulf %260, %47 : vector<8x8xf32>
    %262 = arith.mulf %255, %258 : vector<1x8xf32>
    %263 = vector.broadcast %262 : vector<1x8xf32> to vector<8x8xf32>
    %264 = arith.mulf %263, %87 : vector<8x8xf32>
    %265 = arith.addf %261, %264 : vector<8x8xf32>
    %266 = arith.mulf %80, %44 : vector<8x8xf32>
    %cst_63 = arith.constant dense<0.000000e+00> : vector<8xf32>
    %267 = vector.multi_reduction <add>, %266, %cst_63 [0] : vector<8x8xf32> to vector<8xf32>
    %268 = vector.shape_cast %267 : vector<8xf32> to vector<1x8xf32>
    %269 = arith.mulf %80, %84 : vector<8x8xf32>
    %cst_64 = arith.constant dense<0.000000e+00> : vector<8xf32>
    %270 = vector.multi_reduction <add>, %269, %cst_64 [0] : vector<8x8xf32> to vector<8xf32>
    %271 = vector.shape_cast %270 : vector<8xf32> to vector<1x8xf32>
    %272 = arith.maximumf %268, %271 : vector<1x8xf32>
    %273 = arith.subf %268, %272 : vector<1x8xf32>
    %274 = math.exp %273 : vector<1x8xf32>
    %275 = arith.subf %271, %272 : vector<1x8xf32>
    %276 = math.exp %275 : vector<1x8xf32>
    %277 = arith.addf %274, %276 : vector<1x8xf32>
    %cst_65 = arith.constant 1.000000e+00 : f32
    %278 = vector.broadcast %cst_65 : f32 to vector<1x8xf32>
    %279 = arith.divf %278, %277 : vector<1x8xf32>
    %280 = arith.mulf %274, %279 : vector<1x8xf32>
    %281 = vector.broadcast %280 : vector<1x8xf32> to vector<8x8xf32>
    %282 = arith.mulf %281, %48 : vector<8x8xf32>
    %283 = arith.mulf %276, %279 : vector<1x8xf32>
    %284 = vector.broadcast %283 : vector<1x8xf32> to vector<8x8xf32>
    %285 = arith.mulf %284, %88 : vector<8x8xf32>
    %286 = arith.addf %282, %285 : vector<8x8xf32>
    %287 = tpu.concatenate %223, %244, %265, %286 in 0 : vector<8x8xf32>, vector<8x8xf32>, vector<8x8xf32>, vector<8x8xf32> -> vector<32x8xf32>
    %cst_66 = arith.constant dense<0.000000e+00> : vector<32x8xf32>
    %288 = tpu.matmul %7, %287, %cst_66 {dimension_numbers = #tpu.dot_dimension_numbers<[1], [0], [0], [1], [0, 0, 1, 1], [], []>, precision = #tpu.contract_precision<fp32>} : vector<32x32xf32>, vector<32x8xf32>, vector<32x8xf32> -> vector<32x8xf32>
    %289 = vector.broadcast %8 : vector<32x1xf32> to vector<32x8xf32>
    %290 = arith.addf %288, %289 : vector<32x8xf32>
    %291 = arith.addf %290, %290 : vector<32x8xf32>
    %cst_67 = arith.constant dense<0.000000e+00> : vector<8xf32>
    %292 = vector.multi_reduction <add>, %291, %cst_67 [0] : vector<32x8xf32> to vector<8xf32>
    %293 = vector.shape_cast %292 : vector<8xf32> to vector<1x8xf32>
    %cst_68 = arith.constant 3.200000e+01 : f32
    %294 = vector.broadcast %cst_68 : f32 to vector<1x8xf32>
    %295 = arith.divf %293, %294 : vector<1x8xf32>
    %296 = vector.broadcast %295 : vector<1x8xf32> to vector<32x8xf32>
    %297 = arith.subf %291, %296 : vector<32x8xf32>
    %298 = arith.mulf %297, %297 : vector<32x8xf32>
    %cst_69 = arith.constant dense<0.000000e+00> : vector<8xf32>
    %299 = vector.multi_reduction <add>, %298, %cst_69 [0] : vector<32x8xf32> to vector<8xf32>
    %300 = vector.shape_cast %299 : vector<8xf32> to vector<1x8xf32>
    %cst_70 = arith.constant 3.200000e+01 : f32
    %301 = vector.broadcast %cst_70 : f32 to vector<1x8xf32>
    %302 = arith.divf %300, %301 : vector<1x8xf32>
    %303 = vector.broadcast %295 : vector<1x8xf32> to vector<32x8xf32>
    %304 = arith.subf %291, %303 : vector<32x8xf32>
    %cst_71 = arith.constant 9.99999974E-6 : f32
    %305 = vector.broadcast %cst_71 : f32 to vector<1x8xf32>
    %306 = arith.addf %302, %305 : vector<1x8xf32>
    %307 = math.rsqrt %306 : vector<1x8xf32>
    %308 = vector.broadcast %307 : vector<1x8xf32> to vector<32x8xf32>
    %309 = arith.mulf %304, %308 : vector<32x8xf32>
    %310 = vector.broadcast %3 : vector<32x1xf32> to vector<32x8xf32>
    %311 = arith.mulf %309, %310 : vector<32x8xf32>
    %312 = vector.broadcast %4 : vector<32x1xf32> to vector<32x8xf32>
    %313 = arith.addf %311, %312 : vector<32x8xf32>
    %c1_72 = arith.constant 1 : index
    %c0_73 = arith.constant 0 : index
    %c0_74 = arith.constant 0 : index
    %314 = vector.load %arg11[%c1_72, %c0_73, %c0_74] : memref<2x32x8xf32, #tpu.memory_space<vmem>>, vector<1x32x8xf32>
    %315 = vector.shape_cast %314 : vector<1x32x8xf32> to vector<32x8xf32>
    %316 = vector.shape_cast %313 : vector<32x8xf32> to vector<1x32x8xf32>
    tpu.vector_store %arg11[%c1_72, %c0_73, %c0_74], %316 {strides = array<i32>} : memref<2x32x8xf32, #tpu.memory_space<vmem>>, vector<1x32x8xf32>,
    return
  }
  func.func @transform_0(%arg0: i32) -> (i32, i32, i32) {
    %c0_i32 = arith.constant 0 : i32
    %c0_i32_0 = arith.constant 0 : i32
    %c0_i32_1 = arith.constant 0 : i32
    return %c0_i32, %c0_i32_0, %arg0 : i32, i32, i32
  }
  func.func @transform_1(%arg0: i32) -> (i32, i32) {
    %c0_i32 = arith.constant 0 : i32
    %c0_i32_0 = arith.constant 0 : i32
    return %c0_i32, %arg0 : i32, i32
  }
  func.func @transform_2(%arg0: i32) -> (i32, i32) {
    %c0_i32 = arith.constant 0 : i32
    %c0_i32_0 = arith.constant 0 : i32
    %c0_i32_1 = arith.constant 0 : i32
    return %c0_i32, %c0_i32_0 : i32, i32
  }
  func.func @transform_3(%arg0: i32) -> (i32, i32) {
    %c0_i32 = arith.constant 0 : i32
    %c0_i32_0 = arith.constant 0 : i32
    %c0_i32_1 = arith.constant 0 : i32
    return %c0_i32, %c0_i32_0 : i32, i32
  }
  func.func @transform_4(%arg0: i32) -> (i32, i32) {
    %c0_i32 = arith.constant 0 : i32
    %c0_i32_0 = arith.constant 0 : i32
    %c0_i32_1 = arith.constant 0 : i32
    return %c0_i32, %c0_i32_0 : i32, i32
  }
  func.func @transform_5(%arg0: i32) -> (i32, i32) {
    %c0_i32 = arith.constant 0 : i32
    %c0_i32_0 = arith.constant 0 : i32
    %c0_i32_1 = arith.constant 0 : i32
    return %c0_i32, %c0_i32_0 : i32, i32
  }
  func.func @transform_6(%arg0: i32) -> (i32, i32) {
    %c0_i32 = arith.constant 0 : i32
    %c0_i32_0 = arith.constant 0 : i32
    %c0_i32_1 = arith.constant 0 : i32
    return %c0_i32, %c0_i32_0 : i32, i32
  }
  func.func @transform_7(%arg0: i32) -> (i32, i32) {
    %c0_i32 = arith.constant 0 : i32
    %c0_i32_0 = arith.constant 0 : i32
    %c0_i32_1 = arith.constant 0 : i32
    return %c0_i32, %c0_i32_0 : i32, i32
  }
  func.func @transform_8(%arg0: i32) -> (i32, i32) {
    %c0_i32 = arith.constant 0 : i32
    %c0_i32_0 = arith.constant 0 : i32
    %c0_i32_1 = arith.constant 0 : i32
    return %c0_i32, %c0_i32_0 : i32, i32
  }
  func.func @transform_9(%arg0: i32) -> (i32, i32) {
    %c0_i32 = arith.constant 0 : i32
    %c0_i32_0 = arith.constant 0 : i32
    %c0_i32_1 = arith.constant 0 : i32
    return %c0_i32, %c0_i32_0 : i32, i32
  }
  func.func @transform_10(%arg0: i32) -> (i32, i32, i32) {
    %c0_i32 = arith.constant 0 : i32
    %c0_i32_0 = arith.constant 0 : i32
    %c0_i32_1 = arith.constant 0 : i32
    return %c0_i32, %c0_i32_0, %arg0 : i32, i32, i32
  }
}

</mosaic_0001>

<bundles_post_ra>
// kernel: mha_conv_forward.1
= control target key start
LH: loop header
LB: loop body
LE: loop exit
PB: predicated region body
PF: predicated region fallthrough
CT: control target
= control target key end

     0   :  { %15 = vsyncpa [#allocation3], 0  ;;  %s2655_s16 = smov [#allocation2]   ;;  %s2656_s18 = smov 128   ;;  %s4134_s0 = inlined_call_operand.vmem [shape: f32[2,32,8], index: 0, kind: input, shape index: {}]   ;;  %s4135_s1 = inlined_call_operand.vmem [shape: f32[32,8], index: 1, kind: input, shape index: {}]   ;;  %s4136_s2 = inlined_call_operand.vmem [shape: f32[32,1], index: 2, kind: input, shape index: {}]   ;;  %s4137_s3 = inlined_call_operand.vmem [shape: f32[32,1], index: 3, kind: input, shape index: {}]   ;;  %s4138_s4 = inlined_call_operand.vmem [shape: f32[96,32], index: 4, kind: input, shape index: {}]   ;;  %s4139_s5 = inlined_call_operand.vmem [shape: f32[96,1], index: 5, kind: input, shape index: {}]   ;;  %s4140_s6 = inlined_call_operand.hbm [shape: f32[32,32], index: 6, kind: input, shape index: {}]   ;;  %s4141_s7 = inlined_call_operand.vmem [shape: f32[32,1], index: 7, kind: input, shape index: {}]   ;;  %s4142_s8 = inlined_call_operand.vmem [shape: f32[32,1], index: 8, kind: input, shape index: {}]   ;;  %s4143_s9 = inlined_call_operand.vmem [shape: f32[32,1], index: 9, kind: input, shape index: {}]   ;;  %s4144_s10 = inlined_call_operand.vmem [shape: f32[2,32,8], index: 10, kind: output, shape index: {}]  }
   0x1   :  { %s32_s15 = sshll.u32 %s4140_s6, 4  ;;  %s34_s17 = sshll.u32 %s2655_s16, 4  ;;  %s33_s15 = int_to_ptr.hbm [resolvable:$true] %s32_s15  ;;  %s35_s17 = int_to_ptr.vmem [resolvable:$true] %s34_s17 }
   0x2   :  { %s2657_s19 = smov 8  }
   0x3   :  { %40 = dma.hbm_to_vmem [thread:$0]  %s33_s15, 512, %s35_s17, [#allocation3], %s2656_s18, %s2656_s18, %s2657_s19  }
   0x4   :  { %2653 = dma.done.wait [#allocation3], 512  }
   0x5   :  { %2654 = vsyncadd [#allocation3], 4294966784  ;;  %v2658_v0 = vmov 0   ;;  %v62_v1 = vld [vmem:[%s4137_s3 + $0x18] sm:$0xff]  ;;  %v61_v2 = vld [vmem:[%s4137_s3 + $0x10] sm:$0xff]  ;;  %vm107_vm0 = vcmask 64512  }
   0x6   :  { %2570 = vset.pattern.permute.xlu2 %v2658_v0  ;;  %2569 = vset.pattern.permute.xlu1 %v2658_v0  ;;  %v58_v3 = vld [vmem:[%s4136_s2 + $0x18] sm:$0xff]  ;;  %v56_v4 = vld [vmem:[%s4136_s2 + $0x8] sm:$0xff]  ;;  %v55_v5 = vld [vmem:[%s4136_s2] sm:$0xff]  ;;  %v2659_v26 = vmov 32.0   ;;  %vm278_vm8 = vcmask 261120  }
   0x7   :  { %2568 = vset.pattern.permute.xlu0 %v2658_v0  ;;  %207 = vperm.xlu1 %2569, %v62_v1   ;;  %v57_v6 = vld [vmem:[%s4136_s2 + $0x10] sm:$0xff]  ;;  %v59_v7 = vld [vmem:[%s4137_s3] sm:$0xff]  ;;  %v86_v8 = vld [vmem:[%s4139_s5 + $0x18] sm:$0xff]  ;;  %2571 = vrcp.f32 %v2659_v26 }
   0x8   :  { %202 = vperm.xlu2 %2570, %v61_v2   ;;  %183 = vperm.xlu0 %2568, %v58_v3   ;;  %v60_v9 = vld [vmem:[%s4137_s3 + $0x8] sm:$0xff]  ;;  %v2748_v10 = vld [vmem:[%s4134_s0] sm:$0xff]  ;;  %v105_v17 = vld [vmem:[%s4134_s0 + $0x10] sm:$0xff] }
   0x9   :  { %v2753_v11 = vld [vmem:[%s4134_s0 + $0x8] sm:$0xff]  ;;  %v2758_v12 = vld [vmem:[%s4134_s0 + $0x20] sm:$0xff]  ;;  %v108_v13 = vsel %vm107_vm0, %v2748_v10, 0.0  ;;  %v2557_v19 = vld [vmem:[%s4134_s0 + $0x30] sm:$0xff]  ;;  %v111_v21 = vsel %vm107_vm0, %v105_v17, 0.0 }
   0xa   :  { %v109_v14 = vsel %vm107_vm0, %v2753_v11, 0.0  ;;  %v2556_v15 = vld [vmem:[%s4134_s0 + $0x28] sm:$0xff]  ;;  %v846_v16 = vsel %vm107_vm0, %v2758_v12, 0.0  ;;  %v849_v23 = vsel %vm107_vm0, %v2557_v19, 0.0  ;;  %v106_v24 = vld [vmem:[%s4134_s0 + $0x18] sm:$0xff]  ;;  %v85_v31 = vld [vmem:[%s4139_s5 + $0x10] sm:$0xff] }
   0xb   :  { %v110_v18 = vadd.f32 %v109_v14, %v108_v13  ;;  %v847_v20 = vsel %vm107_vm0, %v2556_v15, 0.0  ;;  %v2558_v27 = vld [vmem:[%s4134_s0 + $0x38] sm:$0xff]  ;;  %v113_v28 = vsel %vm107_vm0, %v106_v24, 0.0  ;;  %v89_v32 = vld [vmem:[%s4139_s5 + $0x30] sm:$0xff]  ;;  %v88_v45 = vld [vmem:[%s4139_s5 + $0x28] sm:$0xff] }
   0xc   :  { %v848_v22 = vadd.f32 %v847_v20, %v846_v16  ;;  %v851_v30 = vsel %vm107_vm0, %v2558_v27, 0.0  ;;  %v90_v34 = vld [vmem:[%s4139_s5 + $0x38] sm:$0xff]  ;;  %v83_v46 = vld [vmem:[%s4139_s5] sm:$0xff]  ;;  %v84_v48 = vld [vmem:[%s4139_s5 + $0x8] sm:$0xff] }
   0xd   :  { %v112_v25 = vadd.f32 %v111_v21, %v110_v18  ;;  %v2572_v38 = vpop.eup %2571  ;;  %v94_v59 = vld [vmem:[%s4139_s5 + $0x58] sm:$0xff]  ;;  %v93_v60 = vld [vmem:[%s4139_s5 + $0x50] sm:$0xff]  ;;  %v87_v63 = vld [vmem:[%s4139_s5 + $0x20] sm:$0xff] }
   0xe   :  { %v850_v29 = vadd.f32 %v849_v23, %v848_v22  ;;  %v122_v40 = vmul.f32 32.0, %v2572_v38  ;;  %vm126_vm1 = vweird.f32 %v2572_v38  ;;  %v91_v23 = vld [vmem:[%s4139_s5 + $0x40] sm:$0xff]  ;;  %v92_v26 = vld [vmem:[%s4139_s5 + $0x48] sm:$0xff] }
   0xf   :  { %173 = vperm.xlu1 %2569, %v56_v4   ;;  %v114_v33 = vadd.f32 %v113_v28, %v112_v25 }
  0x10   :  { %168 = vperm.xlu2 %2570, %v55_v5   ;;  %178 = vperm.xlu0 %2568, %v57_v6   ;;  %v852_v35 = vadd.f32 %v851_v30, %v850_v29  ;;  %v123_v43 = vsub.f32 1.0, %v122_v40 }
  0x11   :  { %v115_v36 = vrot.slane %v114_v33, 4 }
  0x12   :  { %v853_v37 = vrot.slane %v852_v35, 4  ;;  %v124_v49 = vmul.f32 %v2572_v38, %v123_v43  ;;  %v65_v43 = vld [vmem:[%s4142_s8 + $0x10] sm:$0xff] }
  0x13   :  { %v116_v39 = vadd.f32 %v115_v36, %v114_v33  ;;  %v102_v36 = vld [vmem:[%s4141_s7 + $0x18] sm:$0xff] }
  0x14   :  { %v854_v41 = vadd.f32 %v853_v37, %v852_v35  ;;  %v125_v52 = vadd.f32 %v2572_v38, %v124_v49  ;;  %v101_v35 = vld [vmem:[%s4141_s7 + $0x10] sm:$0xff]  ;;  %v100_v37 = vld [vmem:[%s4141_s7 + $0x8] sm:$0xff]  ;;  %v67_v49 = vld [vmem:[%s4143_s9] sm:$0xff] }
  0x15   :  { %v117_v42 = vrot.slane %v116_v39, 2 }
  0x16   :  { %v855_v44 = vrot.slane %v854_v41, 2  ;;  %v2804_v55 = vsel %vm126_vm1, %v2572_v38, %v125_v52 }
  0x17   :  { %192 = vperm.xlu1 %2569, %v59_v7   ;;  %v118_v47 = vadd.f32 %v117_v42, %v116_v39  ;;  %4149 = vst [vmem:[#allocation5_spill] sm:$0xff] %v2804_v55  ;;  %v64_v42 = vld [vmem:[%s4142_s8 + $0x8] sm:$0xff] }
  0x18   :  { %235 = vperm.xlu2 %2570, %v86_v8   ;;  %197 = vperm.xlu0 %2568, %v60_v9   ;;  %v856_v50 = vadd.f32 %v855_v44, %v854_v41  ;;  %v63_v44 = vld [vmem:[%s4142_s8] sm:$0xff] }
  0x19   :  { %v119_v51 = vrot.slane %v118_v47, 1 }
  0x1a   :  { %v857_v53 = vrot.slane %v856_v50, 1 }
  0x1b   :  { %v120_v54 = vadd.f32 %v119_v51, %v118_v47  ;;  %v66_v51 = vld [vmem:[%s4142_s8 + $0x18] sm:$0xff] }
  0x1c   :  { %v858_v56 = vadd.f32 %v857_v53, %v856_v50  ;;  %v68_v50 = vld [vmem:[%s4143_s9 + $0x8] sm:$0xff] }
  0x1d   :  { %v128_v57 = vmul.f32 %v2804_v55, %v120_v54 }
  0x1e   :  { %v859_v58 = vmul.f32 %v858_v56, %v2804_v55 }
  0x1f   :  { %230 = vperm.xlu1 %2569, %v85_v31   ;;  %v2815_v61 = vsub.f32 %v2748_v10, %v128_v57  ;;  %v2818_v62 = vsub.f32 %v2753_v11, %v128_v57  ;;  %v2828_v2 = vsub.f32 %v105_v17, %v128_v57  ;;  %v2840_v8 = vsub.f32 %v106_v24, %v128_v57  ;;  %v99_v24 = vld [vmem:[%s4141_s7] sm:$0xff]  ;;  %v70_v57 = vld [vmem:[%s4143_s9 + $0x18] sm:$0xff] }
  0x20   :  { %250 = vperm.xlu2 %2570, %v89_v32   ;;  %255 = vperm.xlu0 %2568, %v90_v34   ;;  %v2824_v0 = vsub.f32 %v2758_v12, %v859_v58  ;;  %v2826_v1 = vsub.f32 %v2556_v15, %v859_v58  ;;  %v2834_v5 = vsub.f32 %v2557_v19, %v859_v58 }
  0x21   :  { %v133_v3 = vmul.f32 %v2815_v61, %v2815_v61  ;;  %v134_v4 = vmul.f32 %v2818_v62, %v2818_v62  ;;  %v135_v9 = vmul.f32 %v2828_v2, %v2828_v2  ;;  %v2846_v13 = vsub.f32 %v2558_v27, %v859_v58  ;;  %v69_v58 = vld [vmem:[%s4143_s9 + $0x10] sm:$0xff] }
  0x22   :  { %v864_v6 = vmul.f32 %v2824_v0, %v2824_v0  ;;  %v865_v7 = vmul.f32 %v2826_v1, %v2826_v1  ;;  %v866_v14 = vmul.f32 %v2834_v5, %v2834_v5  ;;  %v136_v16 = vmul.f32 %v2840_v8, %v2840_v8 }
  0x23   :  { %v137_v10 = vsel %vm107_vm0, %v133_v3, 0.0  ;;  %v138_v11 = vsel %vm107_vm0, %v134_v4, 0.0  ;;  %v140_v17 = vsel %vm107_vm0, %v135_v9, 0.0  ;;  %v867_v20 = vmul.f32 %v2846_v13, %v2846_v13 }
  0x24   :  { %v139_v12 = vadd.f32 %v138_v11, %v137_v10  ;;  %v868_v15 = vsel %vm107_vm0, %v864_v6, 0.0  ;;  %v869_v18 = vsel %vm107_vm0, %v865_v7, 0.0  ;;  %v871_v22 = vsel %vm107_vm0, %v866_v14, 0.0 }
  0x25   :  { %v870_v21 = vadd.f32 %v869_v18, %v868_v15  ;;  %v142_v25 = vsel %vm107_vm0, %v136_v16, 0.0  ;;  %v873_v29 = vsel %vm107_vm0, %v867_v20, 0.0 }
  0x26   :  { %v141_v19 = vadd.f32 %v140_v17, %v139_v12 }
  0x27   :  { %245 = vperm.xlu1 %2569, %v88_v45   ;;  %v872_v28 = vadd.f32 %v871_v22, %v870_v21  ;;  %v71_v21 = vld [vmem:[%s4138_s4] sm:$0xff] }
  0x28   :  { %220 = vperm.xlu2 %2570, %v83_v46   ;;  %225 = vperm.xlu0 %2568, %v84_v48   ;;  %v143_v27 = vadd.f32 %v142_v25, %v141_v19 }
  0x29   :  { %v874_v31 = vadd.f32 %v873_v29, %v872_v28 }
  0x2a   :  { %v144_v30 = vrot.slane %v143_v27, 4 }
  0x2b   :  { %v875_v32 = vrot.slane %v874_v31, 4 }
  0x2c   :  { %v145_v33 = vadd.f32 %v144_v30, %v143_v27 }
  0x2d   :  { %v876_v34 = vadd.f32 %v875_v32, %v874_v31 }
  0x2e   :  { %v146_v38 = vrot.slane %v145_v33, 2 }
  0x2f   :  { %275 = vperm.xlu1 %2569, %v94_v59   ;;  %v877_v39 = vrot.slane %v876_v34, 2 }
  0x30   :  { %270 = vperm.xlu2 %2570, %v93_v60   ;;  %240 = vperm.xlu0 %2568, %v87_v63   ;;  %v147_v40 = vadd.f32 %v146_v38, %v145_v33 }
  0x31   :  { %v878_v41 = vadd.f32 %v877_v39, %v876_v34 }
  0x32   :  { %v148_v45 = vrot.slane %v147_v40, 1 }
  0x33   :  { %v879_v46 = vrot.slane %v878_v41, 1 }
  0x34   :  { %v149_v47 = vadd.f32 %v148_v45, %v147_v40  ;;  %v53_v40 = vld [vmem:[%s4135_s1 + $0x10] sm:$0xff] }
  0x35   :  { %v880_v48 = vadd.f32 %v879_v46, %v878_v41 }
  0x36   :  { %v150_v52 = vmul.f32 %v149_v47, %v2804_v55 }
  0x37   :  { %260 = vperm.xlu1 %2569, %v91_v23   ;;  %v881_v53 = vmul.f32 %v880_v48, %v2804_v55 }
  0x38   :  { %1613 = vperm.xlu2 %2570, %v99_v24   ;;  %265 = vperm.xlu0 %2568, %v92_v26   ;;  %v151_v54 = vadd.f32 1e-05, %v150_v52  ;;  %v54_v24 = vld [vmem:[%s4135_s1 + $0x18] sm:$0xff] }
  0x39   :  { %v882_v56 = vadd.f32 1e-05, %v881_v53 }
  0x3a   :  { %2573 = vrsqrt.f32 %v151_v54  ;;  %vm158_vm2 = vweird.f32 %v151_v54 }
  0x3b   :  { %2575 = vrsqrt.f32 %v882_v56  ;;  %vm889_vm4 = vweird.f32 %v882_v56 }
  0x3f   :  { %1623 = vperm.xlu1 %2569, %v101_v35  }
  0x40   :  { %1628 = vperm.xlu2 %2570, %v102_v36   ;;  %1618 = vperm.xlu0 %2568, %v100_v37   ;;  %v2574_v59 = vpop.eup %2573 }
  0x41   :  { %v2576_v60 = vpop.eup %2575  ;;  %v153_v63 = vmul.f32 %v2574_v59, %v151_v54  ;;  %vm159_vm3 = vweird.f32 %v2574_v59 }
  0x42   :  { %v884_v3 = vmul.f32 %v2576_v60, %v882_v56  ;;  %vm890_vm5 = vweird.f32 %v2576_v60  ;;  %vm160_vm6 = vmor %vm158_vm2, %vm159_vm3 }
  0x43   :  { %v154_v4 = vmul.f32 %v2574_v59, %v153_v63  ;;  %vm891_vm7 = vmor %vm889_vm4, %vm890_vm5  ;;  %v52_v63 = vld [vmem:[%s4135_s1 + $0x8] sm:$0xff] }
  0x44   :  { %v885_v6 = vmul.f32 %v2576_v60, %v884_v3 }
  0x45   :  { %v155_v7 = vmul.f32 0.5, %v154_v4 }
  0x46   :  { %v886_v9 = vmul.f32 0.5, %v885_v6 }
  0x47   :  { %1983 = vperm.xlu1 %2569, %v64_v42   ;;  %v156_v10 = vsub.f32 1.5, %v155_v7 }
  0x48   :  { %1988 = vperm.xlu2 %2570, %v65_v43   ;;  %1978 = vperm.xlu0 %2568, %v63_v44   ;;  %v887_v11 = vsub.f32 1.5, %v886_v9 }
  0x49   :  { %v157_v12 = vmul.f32 %v2574_v59, %v156_v10 }
  0x4a   :  { %v888_v14 = vmul.f32 %v2576_v60, %v887_v11 }
  0x4b   :  { %v161_v15 = vsel %vm160_vm6, %v2574_v59, %v157_v12 }
  0x4c   :  { %v892_v16 = vsel %vm891_vm7, %v2576_v60, %v888_v14  ;;  %v165_v17 = vmul.f32 %v161_v15, %v2840_v8  ;;  %v280_v8 = vsel %vm278_vm8, %v71_v21, 0  ;;  %v164_v29 = vmul.f32 %v161_v15, %v2828_v2  ;;  %v72_v2 = vld [vmem:[%s4138_s4 + $0x8] sm:$0xff] }
  0x4d   :  { %v896_v18 = vmul.f32 %v892_v16, %v2846_v13  ;;  %v895_v30 = vmul.f32 %v892_v16, %v2834_v5  ;;  %v2915_v31 = vand.u32 4294901760, %v280_v8  ;;  %v162_v5 = vmul.f32 %v161_v15, %v2815_v61 }
  0x4e   :  { %v893_v39 = vmul.f32 %v892_v16, %v2824_v0  ;;  %v163_v41 = vmul.f32 %v161_v15, %v2818_v62  ;;  %v894_v45 = vmul.f32 %v892_v16, %v2826_v1  ;;  %v283_v61 = vsel %vm278_vm8, %v72_v2, 0 }
  0x4f   :  { %2002 = vperm.xlu1 %2569, %v67_v49   ;;  %v2936_v42 = vsub.f32 %v280_v8, %v2915_v31  ;;  %v2961_v6 = vand.u32 4294901760, %v283_v61 }
  0x50   :  { %2007 = vperm.xlu2 %2570, %v68_v50   ;;  %1993 = vperm.xlu0 %2568, %v66_v51  }
  0x51   :  { %v2949_v1 = vand.u32 4294901760, %v2936_v42 }
  0x53   :  { %v338_v15 = vsub.f32 %v2936_v42, %v2949_v1 }
  0x57   :  { %2017 = vperm.xlu1 %2569, %v70_v57   ;;  %v51_v57 = vld [vmem:[%s4135_s1] sm:$0xff] }
  0x58   :  { %2012 = vperm.xlu0 %2568, %v69_v58  }
  0x62   :  { %v203_v25 = vpop.permute.xlu2 %202 }
  0x6a   :  { %v169_v0 = vpop.permute.xlu2 %168 }
  0x6b   :  { %v186_v50 = vmul.f32 %v169_v0, %v162_v5  ;;  %v897_v51 = vmul.f32 %v893_v39, %v169_v0 }
  0x79   :  { %v208_v19 = vpop.permute.xlu1 %207 }
  0x7a   :  { %v184_v20 = vpop.permute.xlu0 %183 }
  0x7b   :  { %v189_v22 = vmul.f32 %v184_v20, %v165_v17  ;;  %v900_v23 = vmul.f32 %v896_v18, %v184_v20  ;;  %v73_v20 = vld [vmem:[%s4138_s4 + $0x10] sm:$0xff] }
  0x7d   :  { %v213_v26 = vadd.f32 %v208_v19, %v189_v22  ;;  %v904_v27 = vadd.f32 %v900_v23, %v208_v19 }
  0x7f   :  { %v217_v28 = vadd.f32 %v213_v26, %v54_v24  ;;  %v908_v13 = vadd.f32 %v904_v27, %v54_v24  ;;  %v2981_v24 = vsub.f32 %v283_v61, %v2961_v6 }
  0x81   :  { %v174_v32 = vpop.permute.xlu1 %173  ;;  %v2917_v33 = vand.u32 4294901760, %v217_v28  ;;  %v2919_v35 = vand.u32 4294901760, %v908_v13  ;;  %v3007_v5 = vand.u32 4294901760, %v2981_v24 }
  0x82   :  { %v179_v34 = vpop.permute.xlu0 %178  ;;  %v187_v52 = vmul.f32 %v174_v32, %v163_v41  ;;  %v898_v54 = vmul.f32 %v894_v45, %v174_v32 }
  0x83   :  { %v188_v36 = vmul.f32 %v179_v34, %v164_v29  ;;  %v899_v37 = vmul.f32 %v895_v30, %v179_v34  ;;  %328 = vmatpush.msra.mxu0 %v2917_v33  ;;  %615 = vmatpush.msra.mxu3 %v2917_v33  ;;  %v2924_v38 = vsub.f32 %v217_v28, %v2917_v33  ;;  %v286_v30 = vsel %vm278_vm8, %v73_v20, 0 }
  0x84   :  { %v2946_v49 = vsub.f32 %v908_v13, %v2919_v35  ;;  %v2993_v13 = vand.u32 4294901760, %v338_v15 }
  0x85   :  { %v212_v43 = vadd.f32 %v203_v25, %v188_v36  ;;  %v903_v44 = vadd.f32 %v899_v37, %v203_v25  ;;  %531 = vmatpush.msra.mxu2 %v2924_v38  ;;  %v446_v46 = vand.u32 4294901760, %v2924_v38 }
  0x86   :  { %v1040_v11 = vand.u32 4294901760, %v2946_v49 }
  0x87   :  { %v216_v47 = vadd.f32 %v212_v43, %v53_v40  ;;  %v907_v48 = vadd.f32 %v903_v44, %v53_v40  ;;  %v447_v62 = vsub.f32 %v2924_v38, %v446_v46  ;;  %v3013_v44 = vand.u32 4294901760, %v286_v30 }
  0x88   :  { %v1041_v8 = vsub.f32 %v2946_v49, %v1040_v11 }
  0x89   :  { %v2951_v53 = vand.u32 4294901760, %v907_v48  ;;  %v193_v56 = vpop.permute.xlu1 %192  ;;  %v2956_v58 = vand.u32 4294901760, %v216_v47  ;;  %v448_v59 = vand.u32 4294901760, %v447_v62  ;;  %v74_v62 = vld [vmem:[%s4138_s4 + $0x18] sm:$0xff]  ;;  %v3030_v38 = vsub.f32 %v286_v30, %v3013_v44 }
  0x8a   :  { %v198_v60 = vpop.permute.xlu0 %197  ;;  %v210_v3 = vadd.f32 %v193_v56, %v186_v50  ;;  %v901_v4 = vadd.f32 %v897_v51, %v193_v56  ;;  %v1042_v39 = vand.u32 4294901760, %v1041_v8 }
  0x8b   :  { %v211_v7 = vadd.f32 %v198_v60, %v187_v52  ;;  %v902_v9 = vadd.f32 %v898_v54, %v198_v60  ;;  %330 = vmatpush.msra.mxu0 %v2956_v58  ;;  %449 = vmatpush.msra.mxu1 %v448_v59  ;;  %v451_v10 = vsub.f32 %v216_v47, %v2956_v58  ;;  %v289_v54 = vsel %vm278_vm8, %v74_v62, 0 }
  0x8c   :  { %v214_v12 = vadd.f32 %v210_v3, %v51_v57  ;;  %v905_v14 = vadd.f32 %v901_v4, %v51_v57  ;;  %617 = vmatpush.msra.mxu3 %v2956_v58  ;;  %v2970_v16 = vsub.f32 %v907_v48, %v2951_v53  ;;  %v346_v48 = vsub.f32 %v2981_v24, %v3007_v5 }
  0x8d   :  { %v215_v17 = vadd.f32 %v211_v7, %v52_v63  ;;  %v906_v18 = vadd.f32 %v902_v9, %v52_v63  ;;  %534 = vmatpush.msra.mxu2 %v451_v10  ;;  %v452_v19 = vand.u32 4294901760, %v451_v10  ;;  %v3039_v59 = vand.u32 4294901760, %v3030_v38  ;;  %v75_v63 = vld [vmem:[%s4138_s4 + $0x20] sm:$0xff]  ;;  %v76_v9 = vld [vmem:[%s4138_s4 + $0x28] sm:$0xff] }
  0x8e   :  { %v2975_v21 = vand.u32 4294901760, %v214_v12  ;;  %v2977_v22 = vand.u32 4294901760, %v905_v14  ;;  %v1046_v23 = vand.u32 4294901760, %v2970_v16  ;;  %v3035_v56 = vand.u32 4294901760, %v346_v48 }
  0x8f   :  { %v2983_v25 = vand.u32 4294901760, %v215_v17  ;;  %v2985_v26 = vand.u32 4294901760, %v906_v18  ;;  %v453_v27 = vsub.f32 %v451_v10, %v452_v19  ;;  %v3041_v60 = vand.u32 4294901760, %v289_v54 }
  0x90   :  { %v2991_v28 = vsub.f32 %v905_v14, %v2977_v22  ;;  %v463_v29 = vsub.f32 %v214_v12, %v2975_v21  ;;  %v1047_v37 = vsub.f32 %v2970_v16, %v1046_v23  ;;  %v354_v3 = vsub.f32 %v3030_v38, %v3039_v59 }
  0x91   :  { %v2998_v32 = vsub.f32 %v906_v18, %v2985_v26  ;;  %332 = vmatpush.msra.mxu0 %v2983_v25  ;;  %619 = vmatpush.msra.mxu3 %v2983_v25  ;;  %v454_v34 = vand.u32 4294901760, %v453_v27  ;;  %v457_v36 = vsub.f32 %v215_v17, %v2983_v25  ;;  %v3056_v4 = vsub.f32 %v289_v54, %v3041_v60  ;;  %v82_v54 = vld [vmem:[%s4138_s4 + $0x58] sm:$0xff] }
  0x92   :  { %v464_v2 = vand.u32 4294901760, %v463_v29  ;;  %v1058_v43 = vand.u32 4294901760, %v2991_v28  ;;  %v1048_v45 = vand.u32 4294901760, %v1047_v37  ;;  %v292_v7 = vsel %vm278_vm8, %v75_v63, 0 }
  0x93   :  { %334 = vmatpush.msra.mxu0 %v2975_v21  ;;  %455 = vmatpush.msra.mxu1 %v454_v34  ;;  %v458_v40 = vand.u32 4294901760, %v457_v36  ;;  %v1052_v41 = vand.u32 4294901760, %v2998_v32  ;;  %v295_v12 = vsel %vm278_vm8, %v76_v9, 0 }
  0x94   :  { %537 = vmatpush.msra.mxu2 %v457_v36  ;;  %621 = vmatpush.msra.mxu3 %v2975_v21  ;;  %v465_v47 = vsub.f32 %v463_v29, %v464_v2  ;;  %v1059_v52 = vsub.f32 %v2991_v28, %v1058_v43  ;;  %v3103_v15 = vand.u32 4294901760, %v295_v12 }
  0x95   :  { %340 = vmatmul.f32.vlgmr.msra.gmra.mxu0 %v2993_v13  ;;  %v459_v61 = vsub.f32 %v457_v36, %v458_v40  ;;  %v1053_v0 = vsub.f32 %v2998_v32, %v1052_v41  ;;  %625 = vmatmul.f32.vlgmr.msra.gmra.mxu3 %v2949_v1 }
  0x96   :  { %1043 = vmatpush.msrb.mxu3 %v1042_v39  ;;  %710 = vmatpush.msrb.mxu0 %v446_v46  ;;  %v466_v46 = vand.u32 4294901760, %v465_v47  ;;  %v1060_v57 = vand.u32 4294901760, %v1059_v52  ;;  %v3113_v17 = vsub.f32 %v295_v12, %v3103_v15  ;;  %v80_v39 = vld [vmem:[%s4138_s4 + $0x48] sm:$0xff]  ;;  %v81_v47 = vld [vmem:[%s4138_s4 + $0x50] sm:$0xff] }
  0x97   :  { %540 = vmatpush.msra.mxu2 %v463_v29  ;;  %v460_v50 = vand.u32 4294901760, %v459_v61  ;;  %v1054_v51 = vand.u32 4294901760, %v1053_v0  ;;  %v79_v29 = vld [vmem:[%s4138_s4 + $0x40] sm:$0xff] }
  0x98   :  { %543 = vmatmul.f32.vlgmr.msra.gmra.mxu2 %v2936_v42  ;;  %1049 = vmatpush.msrb.mxu3 %v1048_v45  ;;  %v3122_v20 = vand.u32 4294901760, %v3113_v17  ;;  %v304_v34 = vsel %vm278_vm8, %v79_v29, 0 }
  0x99   :  { %714 = vmatpush.msrb.mxu0 %v452_v19  ;;  %922 = vmatpush.msrb.mxu2 %v2919_v35 }
  0x9a   :  { %461 = vmatpush.msra.mxu1 %v460_v50  ;;  %1055 = vmatpush.msrb.mxu3 %v1054_v51  ;;  %v310_v50 = vsel %vm278_vm8, %v81_v47, 0 }
  0x9b   :  { %718 = vmatpush.msrb.mxu0 %v458_v40  ;;  %924 = vmatpush.msrb.mxu2 %v2951_v53 }
  0x9c   :  { %467 = vmatpush.msra.mxu1 %v466_v46  ;;  %1061 = vmatpush.msrb.mxu3 %v1060_v57  ;;  %v3204_v46 = vand.u32 4294901760, %v310_v50 }
  0x9d   :  { %722 = vmatpush.msrb.mxu0 %v464_v2  ;;  %926 = vmatpush.msrb.mxu2 %v2985_v26  ;;  %v3164_v2 = vand.u32 4294901760, %v304_v34 }
  0x9e   :  { %348 = vmatmul.f32.gmra.mxu0 %v3035_v56  ;;  %469 = vmatmul.f32.vlgmr.msra.gmra.mxu1 %v2915_v31  ;;  %v3213_v63 = vsub.f32 %v310_v50, %v3204_v46 }
  0x9f   :  { %1125 = vmatpush.msra.mxu0 %v2946_v49  ;;  %785 = vmatpush.msrb.mxu1 %v2917_v33  ;;  %v3069_v33 = vand.u32 4294901760, %v354_v3  ;;  %v3072_v49 = vand.u32 4294901760, %v3056_v4  ;;  %v313_v3 = vsel %vm278_vm8, %v82_v54, 0 }
  0xa0   :  { %928 = vmatpush.msrb.mxu2 %v2977_v22  ;;  %1379 = vmatpush.msra.mxu3 %v2919_v35  ;;  %v3222_v9 = vand.u32 4294901760, %v3213_v63 }
  0xa1   :  { %1128 = vmatpush.msra.mxu0 %v2970_v16  ;;  %787 = vmatpush.msrb.mxu1 %v2956_v58  ;;  %v3074_v58 = vand.u32 4294901760, %v292_v7  ;;  %v362_v10 = vsub.f32 %v3056_v4, %v3072_v49  ;;  %v77_v16 = vld [vmem:[%s4138_s4 + $0x30] sm:$0xff] }
  0xa2   :  { %1304 = vmatpush.msra.mxu2 %v1040_v11  ;;  %1381 = vmatpush.msra.mxu3 %v2951_v53  ;;  %v298_v18 = vsel %vm278_vm8, %v77_v16, 0  ;;  %v418_v12 = vsub.f32 %v3213_v63, %v3222_v9 }
  0xa3   :  { %548 = vmatmul.f32.gmra.mxu2 %v2981_v24  ;;  %1131 = vmatpush.msra.mxu0 %v2998_v32  ;;  %v3090_v11 = vsub.f32 %v292_v7, %v3074_v58 }
  0xa4   :  { %1308 = vmatpush.msra.mxu2 %v1046_v23  ;;  %631 = vmatmul.f32.gmra.mxu3 %v3007_v5  ;;  %v378_v23 = vsub.f32 %v3113_v17, %v3122_v20 }
  0xa5   :  { %789 = vmatpush.msrb.mxu1 %v2983_v25  ;;  %1383 = vmatpush.msra.mxu3 %v2985_v26  ;;  %v3101_v14 = vand.u32 4294901760, %v3090_v11 }
  0xa6   :  { %1134 = vmatpush.msra.mxu0 %v2991_v28  ;;  %1312 = vmatpush.msra.mxu2 %v1052_v41  ;;  %v3139_v27 = vand.u32 4294901760, %v378_v23  ;;  %v3173_v41 = vsub.f32 %v304_v34, %v3164_v2 }
  0xa7   :  { %791 = vmatpush.msrb.mxu1 %v2975_v21  ;;  %1385 = vmatpush.msra.mxu3 %v2977_v22  ;;  %v3124_v21 = vand.u32 4294901760, %v298_v18 }
  0xa8   :  { %1316 = vmatpush.msra.mxu2 %v1058_v43  ;;  %356 = vmatmul.f32.gmra.mxu0 %v3069_v33  ;;  %v307_v43 = vsel %vm278_vm8, %v80_v39, 0  ;;  %v3182_v61 = vand.u32 4294901760, %v3173_v41 }
  0xa9   :  { %1209 = vmatpush.msra.mxu1 %v2919_v35  ;;  %v3098_v35 = vand.u32 4294901760, %v362_v10  ;;  %v3133_v25 = vsub.f32 %v298_v18, %v3124_v21  ;;  %v3184_v0 = vand.u32 4294901760, %v307_v43  ;;  %v3224_v10 = vand.u32 4294901760, %v313_v3 }
  0xaa   :  { %473 = vmatmul.f32.gmra.mxu1 %v2961_v6  ;;  %v402_v48 = vsub.f32 %v3173_v41, %v3182_v61 }
  0xab   :  { %1211 = vmatpush.msra.mxu1 %v2951_v53  ;;  %553 = vmatmul.f32.gmra.mxu2 %v3030_v38  ;;  %v370_v53 = vsub.f32 %v3090_v11, %v3101_v14  ;;  %v3142_v8 = vand.u32 4294901760, %v3133_v25  ;;  %v3193_v62 = vsub.f32 %v307_v43, %v3184_v0  ;;  %v3230_v16 = vsub.f32 %v313_v3, %v3224_v10 }
  0xac   :  { %637 = vmatmul.f32.gmra.mxu3 %v3039_v59  ;;  %v3199_v51 = vand.u32 4294901760, %v402_v48 }
  0xad   :  { %1213 = vmatpush.msra.mxu1 %v2985_v26  ;;  %v3119_v19 = vand.u32 4294901760, %v370_v53  ;;  %v386_v30 = vsub.f32 %v3133_v25, %v3142_v8  ;;  %v3202_v52 = vand.u32 4294901760, %v3193_v62  ;;  %v3235_v53 = vand.u32 4294901760, %v418_v12 }
  0xae   :  { %v3238_v18 = vand.u32 4294901760, %v3230_v16 }
  0xaf   :  { %1215 = vmatpush.msra.mxu1 %v2977_v22  ;;  %v78_v22 = vld [vmem:[%s4138_s4 + $0x38] sm:$0xff]  ;;  %v3159_v36 = vand.u32 4294901760, %v386_v30  ;;  %v410_v57 = vsub.f32 %v3193_v62, %v3202_v52 }
  0xb0   :  { %364 = vmatmul.f32.gmra.mxu0 %v3098_v35  ;;  %v301_v26 = vsel %vm278_vm8, %v78_v22, 0  ;;  %v426_v22 = vsub.f32 %v3230_v16, %v3238_v18 }
  0xb1   :  { %v3144_v28 = vand.u32 4294901760, %v301_v26  ;;  %v3219_v7 = vand.u32 4294901760, %v410_v57 }
  0xb2   :  { %477 = vmatmul.f32.gmra.mxu1 %v3013_v44  ;;  %v3246_v23 = vand.u32 4294901760, %v426_v22 }
  0xb3   :  { %558 = vmatmul.f32.gmra.mxu2 %v3056_v4  ;;  %v3153_v32 = vsub.f32 %v301_v26, %v3144_v28  ;;  %v3260_v26 = vpop.permute.xlu2 %235 }
  0xb4   :  { %643 = vmatmul.f32.gmra.mxu3 %v3072_v49 }
  0xb5   :  { %v3162_v37 = vand.u32 4294901760, %v3153_v32 }
  0xb7   :  { %v394_v40 = vsub.f32 %v3153_v32, %v3162_v37 }
  0xb8   :  { %372 = vmatmul.f32.gmra.mxu0 %v3119_v19 }
  0xb9   :  { %v3179_v45 = vand.u32 4294901760, %v394_v40 }
  0xba   :  { %481 = vmatmul.f32.gmra.mxu1 %v3041_v60 }
  0xbb   :  { %563 = vmatmul.f32.gmra.mxu2 %v3090_v11 }
  0xbc   :  { %649 = vmatmul.f32.gmra.mxu3 %v3101_v14 }
  0xc0   :  { %380 = vmatmul.f32.gmra.mxu0 %v3139_v27 }
  0xc2   :  { %485 = vmatmul.f32.gmra.mxu1 %v3074_v58 }
  0xc3   :  { %568 = vmatmul.f32.gmra.mxu2 %v3113_v17 }
  0xc4   :  { %655 = vmatmul.f32.gmra.mxu3 %v3122_v20 }
  0xc8   :  { %388 = vmatmul.f32.gmra.mxu0 %v3159_v36 }
  0xca   :  { %489 = vmatmul.f32.gmra.mxu1 %v3103_v15 }
  0xcb   :  { %573 = vmatmul.f32.gmra.mxu2 %v3133_v25 }
  0xcc   :  { %661 = vmatmul.f32.gmra.mxu3 %v3142_v8 }
  0xd0   :  { %396 = vmatmul.f32.gmra.mxu0 %v3179_v45 }
  0xd2   :  { %493 = vmatmul.f32.gmra.mxu1 %v3124_v21 }
  0xd3   :  { %578 = vmatmul.f32.gmra.mxu2 %v3153_v32 }
  0xd4   :  { %667 = vmatmul.f32.gmra.mxu3 %v3162_v37 }
  0xd8   :  { %404 = vmatmul.f32.gmra.mxu0 %v3199_v51 }
  0xda   :  { %497 = vmatmul.f32.gmra.mxu1 %v3144_v28 }
  0xdb   :  { %583 = vmatmul.f32.gmra.mxu2 %v3173_v41 }
  0xdc   :  { %673 = vmatmul.f32.gmra.mxu3 %v3182_v61 }
  0xe0   :  { %412 = vmatmul.f32.gmra.mxu0 %v3219_v7 }
  0xe2   :  { %501 = vmatmul.f32.gmra.mxu1 %v3164_v2 }
  0xe3   :  { %588 = vmatmul.f32.gmra.mxu2 %v3193_v62 }
  0xe4   :  { %679 = vmatmul.f32.gmra.mxu3 %v3202_v52 }
  0xe8   :  { %420 = vmatmul.f32.gmra.mxu0 %v3235_v53 }
  0xea   :  { %505 = vmatmul.f32.gmra.mxu1 %v3184_v0 }
  0xeb   :  { %593 = vmatmul.f32.gmra.mxu2 %v3213_v63 }
  0xec   :  { %685 = vmatmul.f32.gmra.mxu3 %v3222_v9 }
  0xf0   :  { %428 = vmatmul.f32.gmra.mxu0 %v3246_v23 }
  0xf2   :  { %509 = vmatmul.f32.gmra.mxu1 %v3204_v46 }
  0xf3   :  { %598 = vmatmul.f32.gmra.mxu2 %v3230_v16 }
  0xf4   :  { %691 = vmatmul.f32.gmra.mxu3 %v3238_v18 }
  0xf8   :  { %724 = vmatmul.f32.vlgmr.msrb.gmra.mxu0 %v2915_v31 }
  0xfa   :  { %513 = vmatmul.f32.gmra.mxu1 %v3224_v10 }
  0xfb   :  { %934 = vmatmul.f32.vlgmr.msrb.gmra.mxu2 %v2993_v13  ;;  %v3266_v13 = vpop.permute.xlu2 %250 }
  0xfc   :  { %1063 = vmatmul.f32.vlgmr.msrb.gmra.mxu3 %v2915_v31 }
 0x100   :  { %728 = vmatmul.f32.gmra.mxu0 %v2961_v6 }
 0x102   :  { %793 = vmatmul.f32.vlgmr.msrb.gmra.mxu1 %v2915_v31 }
 0x103   :  { %942 = vmatmul.f32.gmra.mxu2 %v3035_v56  ;;  %v3273_v29 = vpop.permute.xlu2 %220 }
 0x104   :  { %1067 = vmatmul.f32.gmra.mxu3 %v2961_v6 }
 0x108   :  { %732 = vmatmul.f32.gmra.mxu0 %v3013_v44 }
 0x10a   :  { %797 = vmatmul.f32.gmra.mxu1 %v2961_v6 }
 0x10b   :  { %950 = vmatmul.f32.gmra.mxu2 %v3069_v33  ;;  %v3276_v33 = vpop.permute.xlu0 %255 }
 0x10c   :  { %1071 = vmatmul.f32.gmra.mxu3 %v3013_v44 }
 0x110   :  { %736 = vmatmul.f32.gmra.mxu0 %v3041_v60 }
 0x112   :  { %801 = vmatmul.f32.gmra.mxu1 %v3013_v44  ;;  %v341_v56 = vpop.f32.mrf.mxu0 }
 0x113   :  { %958 = vmatmul.f32.gmra.mxu2 %v3098_v35  ;;  %v342_v30 = vadd.f32 %v341_v56, %v3273_v29  ;;  %v3286_v50 = vpop.permute.xlu0 %225 }
 0x114   :  { %1075 = vmatmul.f32.gmra.mxu3 %v3041_v60 }
 0x118   :  { %740 = vmatmul.f32.gmra.mxu0 %v3074_v58  ;;  %v626_v43 = vpop.f32.mrf.mxu3 }
 0x11a   :  { %805 = vmatmul.f32.gmra.mxu1 %v3041_v60 }
 0x11b   :  { %966 = vmatmul.f32.gmra.mxu2 %v3119_v19  ;;  %v544_v34 = vpop.f32.mrf.mxu2  ;;  %v349_v39 = vpop.f32.mrf.mxu0 }
 0x11c   :  { %v470_v40 = vpop.f32.mrf.mxu1  ;;  %1079 = vmatmul.f32.gmra.mxu3 %v3074_v58  ;;  %v350_v19 = vadd.f32 %v349_v39, %v3286_v50 }
 0x11d   :  { %v471_v35 = vadd.f32 %v470_v40, %v342_v30 }
 0x11f   :  { %v545_v47 = vadd.f32 %v544_v34, %v471_v35 }
 0x120   :  { %744 = vmatmul.f32.gmra.mxu0 %v3103_v15 }
 0x121   :  { %v3281_v48 = vadd.f32 %v626_v43, %v545_v47 }
 0x122   :  { %809 = vmatmul.f32.gmra.mxu1 %v3074_v58 }
 0x123   :  { %974 = vmatmul.f32.gmra.mxu2 %v3139_v27  ;;  %v3295_v27 = vpop.permute.xlu1 %230 }
 0x124   :  { %1083 = vmatmul.f32.gmra.mxu3 %v3103_v15 }
 0x125   :  { %v357_v54 = vpop.f32.mrf.mxu0 }
 0x126   :  { %v549_v57 = vpop.f32.mrf.mxu2  ;;  %v358_v34 = vadd.f32 %v357_v54, %v3295_v27 }
 0x127   :  { %v474_v3 = vpop.f32.mrf.mxu1  ;;  %v632_v22 = vpop.f32.mrf.mxu3 }
 0x128   :  { %v475_v12 = vadd.f32 %v474_v3, %v350_v19  ;;  %748 = vmatmul.f32.gmra.mxu0 %v3124_v21 }
 0x12a   :  { %v550_v56 = vadd.f32 %v549_v57, %v475_v12  ;;  %813 = vmatmul.f32.gmra.mxu1 %v3103_v15 }
 0x12b   :  { %982 = vmatmul.f32.gmra.mxu2 %v3159_v36 }
 0x12c   :  { %v3293_v30 = vadd.f32 %v632_v22, %v550_v56  ;;  %1087 = vmatmul.f32.gmra.mxu3 %v3124_v21 }
 0x12d   :  { %v365_v39 = vpop.f32.mrf.mxu0 }
 0x12e   :  { %v554_v40 = vpop.f32.mrf.mxu2  ;;  %v366_v57 = vadd.f32 %v365_v39, %v3260_v26 }
 0x12f   :  { %v478_v35 = vpop.f32.mrf.mxu1  ;;  %v638_v47 = vpop.f32.mrf.mxu3 }
 0x130   :  { %v479_v43 = vadd.f32 %v478_v35, %v358_v34  ;;  %752 = vmatmul.f32.gmra.mxu0 %v3144_v28 }
 0x132   :  { %v555_v19 = vadd.f32 %v554_v40, %v479_v43  ;;  %817 = vmatmul.f32.gmra.mxu1 %v3124_v21 }
 0x133   :  { %990 = vmatmul.f32.gmra.mxu2 %v3179_v45  ;;  %v3311_v45 = vpop.permute.xlu0 %240 }
 0x134   :  { %v3302_v36 = vadd.f32 %v638_v47, %v555_v19  ;;  %1091 = vmatmul.f32.gmra.mxu3 %v3144_v28 }
 0x135   :  { %v373_v3 = vpop.f32.mrf.mxu0 }
 0x136   :  { %v559_v54 = vpop.f32.mrf.mxu2  ;;  %v374_v39 = vadd.f32 %v373_v3, %v3311_v45 }
 0x137   :  { %v482_v12 = vpop.f32.mrf.mxu1  ;;  %v644_v56 = vpop.f32.mrf.mxu3 }
 0x138   :  { %v483_v22 = vadd.f32 %v482_v12, %v366_v57  ;;  %756 = vmatmul.f32.gmra.mxu0 %v3164_v2  ;;  %v3320_v12 = vpop.permute.xlu1 %245 }
 0x139   :  { %4150 = vst [vmem:[#allocation6_spill] sm:$0xff] %v3320_v12 }
 0x13a   :  { %v560_v34 = vadd.f32 %v559_v54, %v483_v22  ;;  %821 = vmatmul.f32.gmra.mxu1 %v3144_v28 }
 0x13b   :  { %998 = vmatmul.f32.gmra.mxu2 %v3199_v51 }
 0x13c   :  { %v3309_v40 = vadd.f32 %v644_v56, %v560_v34  ;;  %1095 = vmatmul.f32.gmra.mxu3 %v3164_v2 }
 0x13d   :  { %v381_v35 = vpop.f32.mrf.mxu0 }
 0x13e   :  { %v564_v43 = vpop.f32.mrf.mxu2  ;;  %v382_v3 = vadd.f32 %v381_v35, %v3320_v12 }
 0x13f   :  { %v486_v47 = vpop.f32.mrf.mxu1  ;;  %v650_v57 = vpop.f32.mrf.mxu3 }
 0x140   :  { %v487_v19 = vadd.f32 %v486_v47, %v374_v39  ;;  %760 = vmatmul.f32.gmra.mxu0 %v3184_v0 }
 0x142   :  { %v565_v54 = vadd.f32 %v564_v43, %v487_v19  ;;  %825 = vmatmul.f32.gmra.mxu1 %v3164_v2 }
 0x143   :  { %1006 = vmatmul.f32.gmra.mxu2 %v3219_v7 }
 0x144   :  { %v3318_v51 = vadd.f32 %v650_v57, %v565_v54  ;;  %1099 = vmatmul.f32.gmra.mxu3 %v3184_v0 }
 0x145   :  { %v389_v22 = vpop.f32.mrf.mxu0 }
 0x146   :  { %v569_v56 = vpop.f32.mrf.mxu2  ;;  %v390_v19 = vadd.f32 %v389_v22, %v3266_v13 }
 0x147   :  { %v490_v34 = vpop.f32.mrf.mxu1  ;;  %v656_v47 = vpop.f32.mrf.mxu3 }
 0x148   :  { %v491_v39 = vadd.f32 %v490_v34, %v382_v3  ;;  %764 = vmatmul.f32.gmra.mxu0 %v3204_v46 }
 0x14a   :  { %v570_v43 = vadd.f32 %v569_v56, %v491_v39  ;;  %829 = vmatmul.f32.gmra.mxu1 %v3184_v0  ;;  %v3333_v56 = vpop.permute.xlu1 %275 }
 0x14b   :  { %1014 = vmatmul.f32.gmra.mxu2 %v3235_v53  ;;  %4151 = vst [vmem:[#allocation7_spill] sm:$0xff] %v3333_v56 }
 0x14c   :  { %v3327_v7 = vadd.f32 %v656_v47, %v570_v43  ;;  %1103 = vmatmul.f32.gmra.mxu3 %v3204_v46 }
 0x14d   :  { %v397_v57 = vpop.f32.mrf.mxu0 }
 0x14e   :  { %v574_v35 = vpop.f32.mrf.mxu2  ;;  %v398_v22 = vadd.f32 %v397_v57, %v3276_v33 }
 0x14f   :  { %v494_v54 = vpop.f32.mrf.mxu1  ;;  %v662_v12 = vpop.f32.mrf.mxu3 }
 0x150   :  { %v495_v55 = vadd.f32 %v494_v54, %v390_v19  ;;  %768 = vmatmul.f32.gmra.mxu0 %v3224_v10 }
 0x152   :  { %v575_v3 = vadd.f32 %v574_v35, %v495_v55  ;;  %833 = vmatmul.f32.gmra.mxu1 %v3204_v46 }
 0x153   :  { %1022 = vmatmul.f32.gmra.mxu2 %v3246_v23  ;;  %v3345_v23 = vpop.permute.xlu1 %260 }
 0x154   :  { %v3336_v53 = vadd.f32 %v662_v12, %v575_v3  ;;  %1107 = vmatmul.f32.gmra.mxu3 %v3224_v10 }
 0x155   :  { %v405_v34 = vpop.f32.mrf.mxu0 }
 0x156   :  { %v579_v39 = vpop.f32.mrf.mxu2  ;;  %v406_v12 = vadd.f32 %v405_v34, %v3345_v23 }
 0x157   :  { %v498_v47 = vpop.f32.mrf.mxu1  ;;  %v668_v19 = vpop.f32.mrf.mxu3 }
 0x158   :  { %v499_v43 = vadd.f32 %v498_v47, %v398_v22  ;;  %1137 = vmatmul.f32.vlgmr.msra.gmra.mxu0 %v2936_v42 }
 0x15a   :  { %v580_v55 = vadd.f32 %v579_v39, %v499_v43  ;;  %837 = vmatmul.f32.gmra.mxu1 %v3224_v10  ;;  %v3354_v43 = vpop.permute.xlu0 %265 }
 0x15b   :  { %1318 = vmatmul.f32.vlgmr.msra.gmra.mxu2 %v2915_v31 }
 0x15c   :  { %v3343_v35 = vadd.f32 %v668_v19, %v580_v55  ;;  %1387 = vmatmul.f32.vlgmr.msra.gmra.mxu3 %v2915_v31 }
 0x15d   :  { %v413_v57 = vpop.f32.mrf.mxu0 }
 0x15e   :  { %v584_v54 = vpop.f32.mrf.mxu2  ;;  %v414_v31 = vadd.f32 %v413_v57, %v3354_v43 }
 0x15f   :  { %v502_v3 = vpop.f32.mrf.mxu1  ;;  %v674_v47 = vpop.f32.mrf.mxu3 }
 0x160   :  { %v503_v22 = vadd.f32 %v502_v3, %v406_v12  ;;  %1142 = vmatmul.f32.gmra.mxu0 %v2981_v24 }
 0x162   :  { %v585_v42 = vadd.f32 %v584_v54, %v503_v22  ;;  %1219 = vmatmul.f32.vlgmr.msra.gmra.mxu1 %v2949_v1  ;;  %v3363_v54 = vpop.permute.xlu2 %270 }
 0x163   :  { %1322 = vmatmul.f32.gmra.mxu2 %v2961_v6 }
 0x164   :  { %v3352_v39 = vadd.f32 %v674_v47, %v585_v42  ;;  %1391 = vmatmul.f32.gmra.mxu3 %v2961_v6 }
 0x165   :  { %v421_v34 = vpop.f32.mrf.mxu0 }
 0x166   :  { %v589_v19 = vpop.f32.mrf.mxu2  ;;  %v422_v6 = vadd.f32 %v421_v34, %v3363_v54 }
 0x167   :  { %v506_v55 = vpop.f32.mrf.mxu1  ;;  %v680_v3 = vpop.f32.mrf.mxu3 }
 0x168   :  { %v507_v12 = vadd.f32 %v506_v55, %v414_v31  ;;  %1147 = vmatmul.f32.gmra.mxu0 %v3030_v38 }
 0x16a   :  { %v590_v24 = vadd.f32 %v589_v19, %v507_v12  ;;  %1225 = vmatmul.f32.gmra.mxu1 %v3007_v5 }
 0x16b   :  { %1326 = vmatmul.f32.gmra.mxu2 %v3013_v44 }
 0x16c   :  { %v3361_v1 = vadd.f32 %v680_v3, %v590_v24  ;;  %1395 = vmatmul.f32.gmra.mxu3 %v3013_v44 }
 0x16d   :  { %v429_v57 = vpop.f32.mrf.mxu0 }
 0x16e   :  { %v594_v22 = vpop.f32.mrf.mxu2  ;;  %v430_v44 = vadd.f32 %v429_v57, %v3333_v56 }
 0x16f   :  { %v510_v47 = vpop.f32.mrf.mxu1  ;;  %v686_v31 = vpop.f32.mrf.mxu3 }
 0x170   :  { %v511_v42 = vadd.f32 %v510_v47, %v422_v6  ;;  %1152 = vmatmul.f32.gmra.mxu0 %v3056_v4 }
 0x172   :  { %v595_v38 = vadd.f32 %v594_v22, %v511_v42  ;;  %1231 = vmatmul.f32.gmra.mxu1 %v3039_v59 }
 0x173   :  { %1330 = vmatmul.f32.gmra.mxu2 %v3041_v60 }
 0x174   :  { %v3370_v5 = vadd.f32 %v686_v31, %v595_v38  ;;  %1399 = vmatmul.f32.gmra.mxu3 %v3041_v60 }
 0x175   :  { %v725_v34 = vpop.f32.mrf.mxu0 }
 0x176   :  { %4152 = vst [vmem:[#allocation8_spill] sm:$0xff] %v3370_v5  ;;  %v599_v19 = vpop.f32.mrf.mxu2 }
 0x177   :  { %v514_v55 = vpop.f32.mrf.mxu1  ;;  %v692_v3 = vpop.f32.mrf.mxu3 }
 0x178   :  { %v515_v12 = vadd.f32 %v514_v55, %v430_v44  ;;  %1157 = vmatmul.f32.gmra.mxu0 %v3090_v11 }
 0x17a   :  { %v600_v24 = vadd.f32 %v599_v19, %v515_v12  ;;  %1237 = vmatmul.f32.gmra.mxu1 %v3072_v49 }
 0x17b   :  { %1334 = vmatmul.f32.gmra.mxu2 %v3074_v58 }
 0x17c   :  { %v3377_v59 = vadd.f32 %v692_v3, %v600_v24  ;;  %1403 = vmatmul.f32.gmra.mxu3 %v3074_v58 }
 0x17d   :  { %v729_v4 = vpop.f32.mrf.mxu0 }
 0x17e   :  { %4153 = vst [vmem:[#allocation9_spill] sm:$0xff] %v3377_v59  ;;  %v3380_v60 = vpop.f32.mrf.mxu2 }
 0x17f   :  { %v794_v6 = vpop.f32.mrf.mxu1  ;;  %v3382_v57 = vpop.f32.mrf.mxu3 }
 0x180   :  { %1162 = vmatmul.f32.gmra.mxu0 %v3113_v17 }
 0x182   :  { %1243 = vmatmul.f32.gmra.mxu1 %v3101_v14 }
 0x183   :  { %1338 = vmatmul.f32.gmra.mxu2 %v3103_v15 }
 0x184   :  { %1407 = vmatmul.f32.gmra.mxu3 %v3103_v15 }
 0x185   :  { %v733_v49 = vpop.f32.mrf.mxu0 }
 0x186   :  { %v3388_v11 = vpop.f32.mrf.mxu2 }
 0x187   :  { %v798_v22 = vpop.f32.mrf.mxu1  ;;  %v3390_v47 = vpop.f32.mrf.mxu3 }
 0x188   :  { %1167 = vmatmul.f32.gmra.mxu0 %v3133_v25 }
 0x18a   :  { %1249 = vmatmul.f32.gmra.mxu1 %v3122_v20 }
 0x18b   :  { %1342 = vmatmul.f32.gmra.mxu2 %v3124_v21 }
 0x18c   :  { %1411 = vmatmul.f32.gmra.mxu3 %v3124_v21  ;;  %v726_v21 = vadd.f32 %v725_v34, %v3281_v48 }
 0x18d   :  { %v737_v58 = vpop.f32.mrf.mxu0 }
 0x18e   :  { %v3396_v14 = vpop.f32.mrf.mxu2  ;;  %v3416_v44 = vadd.f32 %v794_v6, %v726_v21 }
 0x18f   :  { %v802_v17 = vpop.f32.mrf.mxu1  ;;  %v3398_v42 = vpop.f32.mrf.mxu3 }
 0x190   :  { %1172 = vmatmul.f32.gmra.mxu0 %v3153_v32 }
 0x192   :  { %1255 = vmatmul.f32.gmra.mxu1 %v3142_v8 }
 0x193   :  { %1346 = vmatmul.f32.gmra.mxu2 %v3144_v28 }
 0x194   :  { %1415 = vmatmul.f32.gmra.mxu3 %v3144_v28 }
 0x195   :  { %v741_v15 = vpop.f32.mrf.mxu0 }
 0x196   :  { %v3404_v20 = vpop.f32.mrf.mxu2  ;;  %v742_v8 = vadd.f32 %v741_v15, %v3318_v51 }
 0x197   :  { %v806_v25 = vpop.f32.mrf.mxu1  ;;  %v3406_v31 = vpop.f32.mrf.mxu3 }
 0x198   :  { %1177 = vmatmul.f32.gmra.mxu0 %v3173_v41 }
 0x19a   :  { %1261 = vmatmul.f32.gmra.mxu1 %v3162_v37 }
 0x19b   :  { %1350 = vmatmul.f32.gmra.mxu2 %v3164_v2 }
 0x19c   :  { %1419 = vmatmul.f32.gmra.mxu3 %v3164_v2  ;;  %v730_v2 = vadd.f32 %v729_v4, %v3293_v30 }
 0x19d   :  { %v745_v32 = vpop.f32.mrf.mxu0 }
 0x19e   :  { %v3414_v28 = vpop.f32.mrf.mxu2  ;;  %v746_v41 = vadd.f32 %v745_v32, %v3327_v7  ;;  %v3434_v12 = vadd.f32 %v798_v22, %v730_v2 }
 0x19f   :  { %v810_v38 = vpop.f32.mrf.mxu1  ;;  %v3420_v55 = vpop.f32.mrf.mxu3 }
 0x1a0   :  { %v3418_v19 = vadd.f32 %v810_v38, %v742_v8  ;;  %1182 = vmatmul.f32.gmra.mxu0 %v3193_v62 }
 0x1a2   :  { %v3425_v37 = vmul.f32 %v3418_v19, %v3416_v44  ;;  %1267 = vmatmul.f32.gmra.mxu1 %v3182_v61 }
 0x1a3   :  { %1354 = vmatmul.f32.gmra.mxu2 %v3184_v0 }
 0x1a4   :  { %1423 = vmatmul.f32.gmra.mxu3 %v3184_v0  ;;  %v734_v0 = vadd.f32 %v733_v49, %v3302_v36 }
 0x1a5   :  { %v749_v48 = vpop.f32.mrf.mxu0 }
 0x1a6   :  { %v3432_v51 = vpop.f32.mrf.mxu2  ;;  %v750_v30 = vadd.f32 %v749_v48, %v3336_v53  ;;  %v3452_v6 = vadd.f32 %v802_v17, %v734_v0 }
 0x1a7   :  { %v814_v34 = vpop.f32.mrf.mxu1  ;;  %v3438_v3 = vpop.f32.mrf.mxu3 }
 0x1a8   :  { %v3436_v62 = vadd.f32 %v814_v34, %v746_v41  ;;  %1187 = vmatmul.f32.gmra.mxu0 %v3213_v63 }
 0x1aa   :  { %v3443_v61 = vmul.f32 %v3436_v62, %v3434_v12  ;;  %1273 = vmatmul.f32.gmra.mxu1 %v3202_v52 }
 0x1ab   :  { %1358 = vmatmul.f32.gmra.mxu2 %v3204_v46 }
 0x1ac   :  { %1427 = vmatmul.f32.gmra.mxu3 %v3204_v46  ;;  %v738_v46 = vadd.f32 %v737_v58, %v3309_v40 }
 0x1ad   :  { %v753_v7 = vpop.f32.mrf.mxu0 }
 0x1ae   :  { %v3450_v24 = vpop.f32.mrf.mxu2  ;;  %v754_v36 = vadd.f32 %v753_v7, %v3343_v35  ;;  %v3470_v15 = vadd.f32 %v806_v25, %v738_v46  ;;  %v936_v7 = vadd.f32 %v3380_v60, %v3273_v29  ;;  %v944_v29 = vadd.f32 %v3388_v11, %v3286_v50 }
 0x1af   :  { %v818_v4 = vpop.f32.mrf.mxu1  ;;  %v3456_v22 = vpop.f32.mrf.mxu3  ;;  %v952_v50 = vadd.f32 %v3396_v14, %v3295_v27 }
 0x1b0   :  { %v3454_v63 = vadd.f32 %v818_v4, %v750_v30  ;;  %1192 = vmatmul.f32.gmra.mxu0 %v3230_v16  ;;  %v1065_v46 = vadd.f32 %v3382_v57, %v936_v7  ;;  %v1069_v57 = vadd.f32 %v3390_v47, %v944_v29 }
 0x1b2   :  { %v1523_v52 = vmul.f32 %v3454_v63, %v3452_v6  ;;  %1279 = vmatmul.f32.gmra.mxu1 %v3222_v9 }
 0x1b3   :  { %1362 = vmatmul.f32.gmra.mxu2 %v3224_v10 }
 0x1b4   :  { %1431 = vmatmul.f32.gmra.mxu3 %v3224_v10 }
 0x1b5   :  { %v3466_v53 = vpop.f32.mrf.mxu0 }
 0x1b6   :  { %v3468_v49 = vpop.f32.mrf.mxu2 }
 0x1b7   :  { %v822_v17 = vpop.f32.mrf.mxu1  ;;  %v3474_v21 = vpop.f32.mrf.mxu3 }
 0x1b8   :  { %v3472_v16 = vadd.f32 %v822_v17, %v754_v36 }
 0x1ba   :  { %v3478_v9 = vmul.f32 %v3472_v16, %v3470_v15  ;;  %1285 = vmatmul.f32.gmra.mxu1 %v3238_v18 }
 0x1bd   :  { %v3481_v10 = vpop.f32.mrf.mxu0 }
 0x1be   :  { %v3483_v40 = vpop.f32.mrf.mxu2 }
 0x1bf   :  { %v3485_v35 = vpop.f32.mrf.mxu1  ;;  %v3487_v58 = vpop.f32.mrf.mxu3 }
 0x1c5   :  { %v3489_v25 = vpop.f32.mrf.mxu0 }
 0x1c6   :  { %4154 = vst [vmem:[#allocation10_spill] sm:$0xff] %v3489_v25  ;;  %v3491_v8 = vpop.f32.mrf.mxu2 }
 0x1c7   :  { %v3493_v32 = vpop.f32.mrf.mxu1  ;;  %v3495_v38 = vpop.f32.mrf.mxu3 }
 0x1c8   :  { %4155 = vst [vmem:[#allocation11_spill] sm:$0xff] %v3493_v32 }
 0x1c9   :  { %4156 = vst [vmem:[#allocation12_spill] sm:$0xff] %v3495_v38 }
 0x1cd   :  { %v3497_v2 = vpop.f32.mrf.mxu0 }
 0x1ce   :  { %4157 = vst [vmem:[#allocation13_spill] sm:$0xff] %v3497_v2  ;;  %v3499_v41 = vpop.f32.mrf.mxu2 }
 0x1cf   :  { %4158 = vst [vmem:[#allocation14_spill] sm:$0xff] %v3499_v41  ;;  %v3501_v18 = vpop.f32.mrf.mxu1  ;;  %v3503_v48 = vpop.f32.mrf.mxu3 }
 0x1d0   :  { %4159 = vst [vmem:[#allocation15_spill] sm:$0xff] %v3501_v18 }
 0x1d1   :  { %4160 = vst [vmem:[#allocation16_spill] sm:$0xff] %v3503_v48 }
 0x1d5   :  { %v1138_v0 = vpop.f32.mrf.mxu0 }
 0x1d6   :  { %v3505_v34 = vpop.f32.mrf.mxu2  ;;  %v1139_v36 = vadd.f32 %v1138_v0, %v1065_v46  ;;  %v1436_v0 = vsel %vm107_vm0, %v3425_v37, 0.0 }
 0x1d7   :  { %4161 = vst [vmem:[#allocation17_spill] sm:$0xff] %v3505_v34  ;;  %v3507_v30 = vpop.f32.mrf.mxu1  ;;  %v3511_v4 = vpop.f32.mrf.mxu3  ;;  %v1437_v46 = vrot.slane %v1436_v0, 4 }
 0x1d8   :  { %4162 = vst [vmem:[#allocation18_spill] sm:$0xff] %v3507_v30 }
 0x1d9   :  { %4163 = vst [vmem:[#allocation19_spill] sm:$0xff] %v3511_v4  ;;  %v1438_v29 = vadd.f32 %v1437_v46, %v1436_v0 }
 0x1db   :  { %v1439_v27 = vrot.slane %v1438_v29, 2 }
 0x1dd   :  { %v1143_v17 = vpop.f32.mrf.mxu0 }
 0x1de   :  { %v1319_v2 = vpop.f32.mrf.mxu2 }
 0x1df   :  { %v1220_v59 = vpop.f32.mrf.mxu1  ;;  %v1388_v18 = vpop.f32.mrf.mxu3 }
 0x1e0   :  { %v1221_v25 = vadd.f32 %v1220_v59, %v1139_v36  ;;  %v1144_v59 = vadd.f32 %v1143_v17, %v1069_v57  ;;  %v1524_v36 = vsel %vm107_vm0, %v1523_v52, 0.0  ;;  %v1073_v57 = vadd.f32 %v3398_v42, %v952_v50 }
 0x1e1   :  { %v1525_v4 = vrot.slane %v1524_v36, 4 }
 0x1e2   :  { %v1320_v5 = vadd.f32 %v1319_v2, %v1221_v25  ;;  %v1480_v2 = vsel %vm107_vm0, %v3443_v61, 0.0  ;;  %v960_v61 = vadd.f32 %v3404_v20, %v3260_v26  ;;  %v1440_v20 = vadd.f32 %v1439_v27, %v1438_v29 }
 0x1e3   :  { %v1481_v11 = vrot.slane %v1480_v2, 4  ;;  %v1526_v14 = vadd.f32 %v1525_v4, %v1524_v36 }
 0x1e4   :  { %v3514_v48 = vadd.f32 %v1388_v18, %v1320_v5  ;;  %v1077_v42 = vadd.f32 %v3406_v31, %v960_v61 }
 0x1e5   :  { %v1148_v30 = vpop.f32.mrf.mxu0  ;;  %v1482_v56 = vadd.f32 %v1481_v11, %v1480_v2  ;;  %v1527_v50 = vrot.slane %v1526_v14, 2 }
 0x1e6   :  { %v2028_v38 = vmul.f32 %v3514_v48, %v3418_v19  ;;  %v1323_v32 = vpop.f32.mrf.mxu2 }
 0x1e7   :  { %v1226_v34 = vpop.f32.mrf.mxu1  ;;  %v1392_v60 = vpop.f32.mrf.mxu3 }
 0x1e8   :  { %v1227_v19 = vadd.f32 %v1226_v34, %v1144_v59  ;;  %v968_v34 = vadd.f32 %v3414_v28, %v3311_v45  ;;  %v2029_v0 = vsel %vm107_vm0, %v2028_v38, 0.0  ;;  %v4164_v38 = vld [vmem:[#allocation6_spill] sm:$0xff] }
 0x1e9   :  { %v2030_v45 = vrot.slane %v2029_v0, 4 }
 0x1ea   :  { %v1324_v47 = vadd.f32 %v1323_v32, %v1227_v19  ;;  %v1149_v32 = vadd.f32 %v1148_v30, %v1073_v57  ;;  %v1483_v19 = vrot.slane %v1482_v56, 2  ;;  %v1081_v2 = vadd.f32 %v3420_v55, %v968_v34 }
 0x1eb   :  { %v1441_v34 = vrot.slane %v1440_v20, 1  ;;  %v2031_v29 = vadd.f32 %v2030_v45, %v2029_v0 }
 0x1ec   :  { %v3533_v52 = vadd.f32 %v1392_v60, %v1324_v47  ;;  %v1484_v4 = vadd.f32 %v1483_v19, %v1482_v56  ;;  %v1568_v56 = vsel %vm107_vm0, %v3478_v9, 0.0 }
 0x1ed   :  { %v1153_v7 = vpop.f32.mrf.mxu0  ;;  %v2032_v0 = vrot.slane %v2031_v29, 2 }
 0x1ee   :  { %v1327_v25 = vpop.f32.mrf.mxu2  ;;  %v2072_v26 = vmul.f32 %v3533_v52, %v3436_v62  ;;  %v1154_v28 = vadd.f32 %v1153_v7, %v1077_v42  ;;  %v1528_v62 = vadd.f32 %v1527_v50, %v1526_v14  ;;  %v984_v7 = vadd.f32 %v3450_v24, %v3266_v13 }
 0x1ef   :  { %v1232_v5 = vpop.f32.mrf.mxu1  ;;  %v1396_v18 = vpop.f32.mrf.mxu3  ;;  %v1485_v27 = vrot.slane %v1484_v4, 1  ;;  %v992_v14 = vadd.f32 %v3468_v49, %v3276_v33  ;;  %v1569_v13 = vrot.slane %v1568_v56, 4 }
 0x1f0   :  { %v1233_v46 = vadd.f32 %v1232_v5, %v1149_v32  ;;  %v976_v5 = vadd.f32 %v3432_v51, %v4164_v38  ;;  %v2073_v31 = vsel %vm107_vm0, %v2072_v26, 0.0  ;;  %v1529_v42 = vrot.slane %v1528_v62, 1 }
 0x1f2   :  { %v1328_v30 = vadd.f32 %v1327_v25, %v1233_v46  ;;  %v2074_v25 = vrot.slane %v2073_v31, 4  ;;  %v1085_v51 = vadd.f32 %v3438_v3, %v976_v5  ;;  %v3550_v46 = vadd.f32 %v1441_v34, %v1440_v20 }
 0x1f3   :  { %v1089_v3 = vadd.f32 %v3456_v22, %v984_v7 }
 0x1f4   :  { %v3547_v32 = vadd.f32 %v1396_v18, %v1328_v30  ;;  %v3556_v18 = vadd.f32 %v1485_v27, %v1484_v4  ;;  %v3567_v4 = vadd.f32 %v1529_v42, %v1528_v62  ;;  %v1570_v30 = vadd.f32 %v1569_v13, %v1568_v56 }
 0x1f5   :  { %v1158_v37 = vpop.f32.mrf.mxu0 }
 0x1f6   :  { %v1331_v17 = vpop.f32.mrf.mxu2  ;;  %v1159_v60 = vadd.f32 %v1158_v37, %v1081_v2  ;;  %v2116_v20 = vmul.f32 %v3547_v32, %v3454_v63  ;;  %v1093_v63 = vadd.f32 %v3474_v21, %v992_v14  ;;  %v1571_v27 = vrot.slane %v1570_v30, 2 }
 0x1f7   :  { %v1238_v41 = vpop.f32.mrf.mxu1  ;;  %v1400_v59 = vpop.f32.mrf.mxu3 }
 0x1f8   :  { %v1239_v57 = vadd.f32 %v1238_v41, %v1154_v28  ;;  %v2117_v38 = vsel %vm107_vm0, %v2116_v20, 0.0 }
 0x1fa   :  { %v1332_v19 = vadd.f32 %v1331_v17, %v1239_v57  ;;  %v2075_v17 = vadd.f32 %v2074_v25, %v2073_v31  ;;  %v3573_v57 = vadd.f32 %v3481_v10, %v3361_v1 }
 0x1fc   :  { %v3561_v28 = vadd.f32 %v1400_v59, %v1332_v19  ;;  %v2076_v59 = vrot.slane %v2075_v17, 2 }
 0x1fd   :  { %v1163_v11 = vpop.f32.mrf.mxu0 }
 0x1fe   :  { %v1335_v47 = vpop.f32.mrf.mxu2  ;;  %v1164_v24 = vadd.f32 %v1163_v11, %v1085_v51  ;;  %v2033_v11 = vadd.f32 %v2032_v0, %v2031_v29  ;;  %v2118_v29 = vrot.slane %v2117_v38, 4  ;;  %v2077_v56 = vadd.f32 %v2076_v59, %v2075_v17 }
 0x1ff   :  { %v1244_v36 = vpop.f32.mrf.mxu1  ;;  %v1404_v61 = vpop.f32.mrf.mxu3 }
 0x200   :  { %v1245_v55 = vadd.f32 %v1244_v36, %v1159_v60  ;;  %v2034_v21 = vrot.slane %v2033_v11, 1 }
 0x202   :  { %v1336_v37 = vadd.f32 %v1335_v47, %v1245_v55 }
 0x204   :  { %v1405_v41 = vadd.f32 %v1404_v61, %v1336_v37 }
 0x205   :  { %v1168_v50 = vpop.f32.mrf.mxu0 }
 0x206   :  { %v1443_v2 = vmul.f32 %v1405_v41, %v3416_v44  ;;  %v2036_v9 = vmul.f32 %v1405_v41, %v3514_v48  ;;  %v1339_v26 = vpop.f32.mrf.mxu2  ;;  %v758_v48 = vadd.f32 %v3466_v53, %v3352_v39  ;;  %v1000_v39 = vadd.f32 %v3483_v40, %v3345_v23 }
 0x207   :  { %v1250_v45 = vpop.f32.mrf.mxu1  ;;  %v1408_v60 = vpop.f32.mrf.mxu3  ;;  %v2160_v53 = vmul.f32 %v3561_v28, %v3472_v16  ;;  %v1169_v7 = vadd.f32 %v1168_v50, %v1089_v3  ;;  %v3590_v50 = vadd.f32 %v1571_v27, %v1570_v30 }
 0x208   :  { %v1444_v33 = vsel %vm107_vm0, %v1443_v2, 0.0  ;;  %v2037_v49 = vsel %vm107_vm0, %v2036_v9, 0.0  ;;  %v1251_v44 = vadd.f32 %v1250_v45, %v1164_v24  ;;  %v3580_v61 = vadd.f32 %v3485_v35, %v758_v48 }
 0x209   :  { %v1445_v47 = vrot.slane %v1444_v33, 4  ;;  %v2038_v22 = vrot.slane %v2037_v49, 4  ;;  %v2161_v16 = vsel %vm107_vm0, %v2160_v53, 0.0  ;;  %v2035_v24 = vadd.f32 %v2034_v21, %v2033_v11 }
 0x20a   :  { %v1340_v36 = vadd.f32 %v1339_v26, %v1251_v44  ;;  %v2119_v2 = vadd.f32 %v2118_v29, %v2117_v38  ;;  %v2078_v45 = vrot.slane %v2077_v56, 1 }
 0x20b   :  { %v1446_v5 = vadd.f32 %v1445_v47, %v1444_v33  ;;  %v2039_v31 = vadd.f32 %v2038_v22, %v2037_v49  ;;  %v2162_v33 = vrot.slane %v2161_v16, 4 }
 0x20c   :  { %v1409_v55 = vadd.f32 %v1408_v60, %v1340_v36  ;;  %v2120_v22 = vrot.slane %v2119_v2, 2 }
 0x20d   :  { %v1447_v34 = vrot.slane %v1446_v5, 2  ;;  %v2040_v62 = vrot.slane %v2039_v31, 2  ;;  %v1173_v13 = vpop.f32.mrf.mxu0 }
 0x20e   :  { %v1487_v37 = vmul.f32 %v1409_v55, %v3434_v12  ;;  %v2080_v1 = vmul.f32 %v1409_v55, %v3533_v52  ;;  %v1343_v10 = vpop.f32.mrf.mxu2  ;;  %v3588_v52 = vadd.f32 %v3487_v58, %v1000_v39  ;;  %v1174_v58 = vadd.f32 %v1173_v13, %v1093_v63 }
 0x20f   :  { %v1448_v23 = vadd.f32 %v1447_v34, %v1446_v5  ;;  %v2041_v40 = vadd.f32 %v2040_v62, %v2039_v31  ;;  %v1256_v25 = vpop.f32.mrf.mxu1  ;;  %v1412_v41 = vpop.f32.mrf.mxu3  ;;  %v2163_v62 = vadd.f32 %v2162_v33, %v2161_v16 }
 0x210   :  { %v1488_v35 = vsel %vm107_vm0, %v1487_v37, 0.0  ;;  %v2081_v51 = vsel %vm107_vm0, %v2080_v1, 0.0  ;;  %v1257_v19 = vadd.f32 %v1256_v25, %v1169_v7 }
 0x211   :  { %v1449_v42 = vrot.slane %v1448_v23, 1  ;;  %v2042_v14 = vrot.slane %v2041_v40, 1  ;;  %v1489_v0 = vrot.slane %v1488_v35, 4  ;;  %v2082_v12 = vrot.slane %v2081_v51, 4 }
 0x212   :  { %v1344_v9 = vadd.f32 %v1343_v10, %v1257_v19  ;;  %v3598_v10 = vadd.f32 %v2078_v45, %v2077_v56 }
 0x213   :  { %v1450_v26 = vadd.f32 %v1449_v42, %v1448_v23  ;;  %v2043_v3 = vadd.f32 %v2042_v14, %v2041_v40  ;;  %v1490_v17 = vadd.f32 %v1489_v0, %v1488_v35  ;;  %v2083_v20 = vadd.f32 %v2082_v12, %v2081_v51 }
 0x214   :  { %v1413_v49 = vadd.f32 %v1412_v41, %v1344_v9  ;;  %v2121_v14 = vadd.f32 %v2120_v22, %v2119_v2  ;;  %v2164_v0 = vrot.slane %v2163_v62, 2 }
 0x215   :  { %v1451_v44 = vmax.f32 %v3550_v46, %v1450_v26  ;;  %v2044_v60 = vmax.f32 %v2035_v24, %v2043_v3  ;;  %v1491_v48 = vrot.slane %v1490_v17, 2  ;;  %v2084_v47 = vrot.slane %v2083_v20, 2  ;;  %v1178_v40 = vpop.f32.mrf.mxu0 }
 0x216   :  { %v1531_v11 = vmul.f32 %v1413_v49, %v3452_v6  ;;  %v2124_v36 = vmul.f32 %v1413_v49, %v3547_v32  ;;  %v1347_v34 = vpop.f32.mrf.mxu2 }
 0x217   :  { %v1452_v59 = vsub.f32 %v3550_v46, %v1451_v44  ;;  %v1455_v38 = vsub.f32 %v1450_v26, %v1451_v44  ;;  %v2045_v5 = vsub.f32 %v2035_v24, %v2044_v60  ;;  %v2048_v30 = vsub.f32 %v2043_v3, %v2044_v60  ;;  %v1262_v31 = vpop.f32.mrf.mxu1  ;;  %v1416_v32 = vpop.f32.mrf.mxu3 }
 0x218   :  { %v1492_v39 = vadd.f32 %v1491_v48, %v1490_v17  ;;  %v2085_v53 = vadd.f32 %v2084_v47, %v2083_v20  ;;  %v1532_v55 = vsel %vm107_vm0, %v1531_v11, 0.0  ;;  %v2125_v21 = vsel %vm107_vm0, %v2124_v36, 0.0 }
 0x219   :  { %v1533_v29 = vrot.slane %v1532_v55, 4  ;;  %v2126_v63 = vrot.slane %v2125_v21, 4  ;;  %v1263_v7 = vadd.f32 %v1262_v31, %v1174_v58  ;;  %v1453_v1 = vmul.f32 1.442695, %v1452_v59 }
 0x21a   :  { %v1493_v6 = vrot.slane %v1492_v39, 1  ;;  %v2086_v37 = vrot.slane %v2085_v53, 1  ;;  %v1456_v46 = vmul.f32 1.442695, %v1455_v38  ;;  %v2046_v19 = vmul.f32 1.442695, %v2045_v5 }
 0x21b   :  { %v1534_v27 = vadd.f32 %v1533_v29, %v1532_v55  ;;  %v2127_v23 = vadd.f32 %v2126_v63, %v2125_v21  ;;  %v1348_v25 = vadd.f32 %v1347_v34, %v1263_v7  ;;  %2577 = vpow2.f32 %v1453_v1  ;;  %v4167_v1 = vld [vmem:[#allocation17_spill] sm:$0xff] }
 0x21c   :  { %v1494_v35 = vadd.f32 %v1493_v6, %v1492_v39  ;;  %v3600_v51 = vadd.f32 %v2086_v37, %v2085_v53  ;;  %2579 = vpow2.f32 %v1456_v46  ;;  %v2049_v13 = vmul.f32 1.442695, %v2048_v30  ;;  %v4165_v6 = vld [vmem:[#allocation14_spill] sm:$0xff] }
 0x21d   :  { %v1535_v16 = vrot.slane %v1534_v27, 2  ;;  %v2128_v41 = vrot.slane %v2127_v23, 2  ;;  %v1417_v42 = vadd.f32 %v1416_v32, %v1348_v25  ;;  %v1573_v3 = vrot.slane %v3590_v50, 1  ;;  %v1183_v31 = vpop.f32.mrf.mxu0  ;;  %v4166_v32 = vld [vmem:[#allocation7_spill] sm:$0xff] }
 0x21e   :  { %v1495_v12 = vmax.f32 %v3556_v18, %v1494_v35  ;;  %v2088_v45 = vmax.f32 %v3598_v10, %v3600_v51  ;;  %2581 = vpow2.f32 %v2046_v19  ;;  %v1179_v30 = vadd.f32 %v1178_v40, %v3588_v52  ;;  %v1351_v52 = vpop.f32.mrf.mxu2 }
 0x21f   :  { %v1536_v56 = vadd.f32 %v1535_v16, %v1534_v27  ;;  %v2129_v24 = vadd.f32 %v2128_v41, %v2127_v23  ;;  %v1575_v9 = vmul.f32 %v1417_v42, %v3470_v15  ;;  %v2168_v26 = vmul.f32 %v1417_v42, %v3561_v28  ;;  %v1268_v11 = vpop.f32.mrf.mxu1 }
 0x220   :  { %v1496_v17 = vsub.f32 %v3556_v18, %v1495_v12  ;;  %v1499_v20 = vsub.f32 %v1494_v35, %v1495_v12  ;;  %v1008_v15 = vadd.f32 %v3491_v8, %v3354_v43  ;;  %v2122_v28 = vrot.slane %v2121_v14, 1  ;;  %v4168_v35 = vld [vmem:[#allocation11_spill] sm:$0xff]  ;;  %v4169_v12 = vld [vmem:[#allocation12_spill] sm:$0xff] }
 0x221   :  { %v1537_v33 = vrot.slane %v1536_v56, 1  ;;  %v1576_v2 = vsel %vm107_vm0, %v1575_v9, 0.0  ;;  %v2169_v49 = vsel %vm107_vm0, %v2168_v26, 0.0  ;;  %v3611_v44 = vpop.eup %2577  ;;  %v2165_v18 = vadd.f32 %v2164_v0, %v2163_v62  ;;  %v4171_v9 = vld [vmem:[#allocation19_spill] sm:$0xff] }
 0x222   :  { %v1577_v60 = vrot.slane %v1576_v2, 4  ;;  %v2170_v48 = vrot.slane %v2169_v49, 4  ;;  %v3615_v47 = vpop.eup %2579  ;;  %v2130_v58 = vrot.slane %v2129_v24, 1  ;;  %2583 = vpow2.f32 %v2049_v13  ;;  %v4170_v13 = vld [vmem:[#allocation16_spill] sm:$0xff] }
 0x223   :  { %v3617_v22 = vadd.f32 %v1537_v33, %v1536_v56  ;;  %v3621_v38 = vadd.f32 %v3615_v47, %v3611_v44  ;;  %v1497_v5 = vmul.f32 1.442695, %v1496_v17  ;;  %v2089_v43 = vsub.f32 %v3598_v10, %v2088_v45 }
 0x224   :  { %v1578_v36 = vadd.f32 %v1577_v60, %v1576_v2  ;;  %v2171_v59 = vadd.f32 %v2170_v48, %v2169_v49  ;;  %v1500_v39 = vmul.f32 1.442695, %v1499_v20  ;;  %v2092_v53 = vsub.f32 %v3600_v51, %v2088_v45  ;;  %v3631_v34 = vpop.eup %2581 }
 0x225   :  { %v3626_v8 = vmax.f32 %v3567_v4, %v3617_v22  ;;  %2585 = vrcp.f32 %v3621_v38  ;;  %v3637_v63 = vadd.f32 %v2130_v58, %v2129_v24  ;;  %v1269_v7 = vadd.f32 %v1268_v11, %v1179_v30  ;;  %v1188_v58 = vpop.f32.mrf.mxu0 }
 0x226   :  { %v1579_v55 = vrot.slane %v1578_v36, 2  ;;  %v2172_v21 = vrot.slane %v2171_v59, 2  ;;  %v1016_v37 = vadd.f32 %v4165_v6, %v3363_v54  ;;  %v1024_v46 = vadd.f32 %v4167_v1, %v4166_v32 }
 0x227   :  { %v1540_v62 = vsub.f32 %v3567_v4, %v3626_v8  ;;  %v1543_v29 = vsub.f32 %v3617_v22, %v3626_v8  ;;  %2587 = vpow2.f32 %v1497_v5  ;;  %v3645_v23 = vadd.f32 %v2122_v28, %v2121_v14  ;;  %v1274_v45 = vpop.f32.mrf.mxu1 }
 0x228   :  { %v1580_v10 = vadd.f32 %v1579_v55, %v1578_v36  ;;  %v3643_v27 = vpop.eup %2583  ;;  %v2166_v4 = vrot.slane %v2165_v18, 1  ;;  %v2173_v40 = vadd.f32 %v2172_v21, %v2171_v59  ;;  %2589 = vpow2.f32 %v1500_v39 }
 0x229   :  { %v3648_v25 = vadd.f32 %v1573_v3, %v3590_v50  ;;  %v3652_v51 = vadd.f32 %v4168_v35, %v3573_v57  ;;  %v3656_v19 = vadd.f32 %v3643_v27, %v3631_v34  ;;  %v3660_v16 = vmax.f32 %v3645_v23, %v3637_v63  ;;  %v1420_v57 = vpop.f32.mrf.mxu3 }
 0x22a   :  { %v1581_v54 = vrot.slane %v1580_v10, 1  ;;  %v1352_v41 = vadd.f32 %v1351_v52, %v1269_v7  ;;  %v2090_v42 = vmul.f32 1.442695, %v2089_v43  ;;  %v2093_v14 = vmul.f32 1.442695, %v2092_v53 }
 0x22b   :  { %v2586_v0 = vpop.eup %2585  ;;  %v1101_v50 = vadd.f32 %v4169_v12, %v1008_v15  ;;  %v1105_v56 = vadd.f32 %v4170_v13, %v1016_v37  ;;  %2591 = vrcp.f32 %v3656_v19  ;;  %v3668_v26 = vadd.f32 %v4171_v9, %v1024_v46 }
 0x22c   :  { %v3664_v24 = vadd.f32 %v1581_v54, %v1580_v10  ;;  %v3670_v3 = vadd.f32 %v2166_v4, %v2165_v18  ;;  %v2174_v17 = vrot.slane %v2173_v40, 1  ;;  %v1460_v20 = vmul.f32 %v2586_v0, %v3621_v38 }
 0x22d   :  { %v3673_v33 = vpop.eup %2587  ;;  %v1184_v49 = vadd.f32 %v1183_v31, %v1101_v50  ;;  %v1468_v15 = vand.u32 2147483647, %v3621_v38  ;;  %2593 = vpow2.f32 %v2090_v42  ;;  %v2133_v60 = vsub.f32 %v3645_v23, %v3660_v16  ;;  %v1355_v31 = vpop.f32.mrf.mxu2 }
 0x22e   :  { %v3677_v2 = vmax.f32 %v3648_v25, %v3664_v24  ;;  %v3680_v28 = vpop.eup %2589  ;;  %v3684_v48 = vadd.f32 %v1420_v57, %v1352_v41  ;;  %v1461_v18 = vsub.f32 1.0, %v1460_v20  ;;  %2595 = vpow2.f32 %v2093_v14 }
 0x22f   :  { %v1470_v59 = vand.u32 2147483648, %v3621_v38  ;;  %v1275_v5 = vadd.f32 %v1274_v45, %v1184_v49  ;;  %v3691_v43 = vadd.f32 %v2174_v17, %v2173_v40  ;;  %vm1465_vm9 = vweird.f32 %v2586_v0  ;;  %v1280_v17 = vpop.f32.mrf.mxu1 }
 0x230   :  { %v1584_v11 = vsub.f32 %v3648_v25, %v3677_v2  ;;  %v1587_v36 = vsub.f32 %v3664_v24, %v3677_v2  ;;  %v1462_v30 = vmul.f32 %v2586_v0, %v1461_v18  ;;  %v3695_v39 = vadd.f32 %v3680_v28, %v3673_v33 }
 0x231   :  { %v2592_v53 = vpop.eup %2591  ;;  %v2136_v55 = vsub.f32 %v3637_v63, %v3660_v16  ;;  %vm1464_vm10 = vweird.f32 %v3621_v38  ;;  %vm3700_vm11 = vcmp.eq.f32.partialorder %v1468_v15, 8.507059e+37  ;;  %v3704_v7 = vadd.f32 %v1188_v58, %v1105_v56 }
 0x232   :  { %v1463_v52 = vadd.f32 %v2586_v0, %v1462_v30  ;;  %v2053_v6 = vmul.f32 %v2592_v53, %v3656_v19  ;;  %2597 = vrcp.f32 %v3695_v39  ;;  %v1541_v37 = vmul.f32 1.442695, %v1540_v62  ;;  %vm1466_vm12 = vmor %vm1464_vm10, %vm1465_vm9 }
 0x233   :  { %v3708_v32 = vpop.eup %2593  ;;  %v1471_v1 = vor.u32 1.1754944e-38, %v1470_v59  ;;  %v2061_v63 = vand.u32 2147483647, %v3656_v19  ;;  %v2063_v38 = vand.u32 2147483648, %v3656_v19  ;;  %v3712_v46 = vadd.f32 %v1355_v31, %v1275_v5 }
 0x234   :  { %v3714_v10 = vpop.eup %2595  ;;  %v2176_v23 = vmax.f32 %v3670_v3, %v3691_v43  ;;  %v1467_v4 = vsel %vm1466_vm12, %v2586_v0, %v1463_v52  ;;  %v2054_v40 = vsub.f32 1.0, %v2053_v6  ;;  %v1544_v62 = vmul.f32 1.442695, %v1543_v29 }
 0x235   :  { %v1472_v25 = vsel %vm3700_vm11, %v1471_v1, %v1467_v4  ;;  %vm2058_vm13 = vweird.f32 %v2592_v53  ;;  %v3725_v35 = vadd.f32 %v3714_v10, %v3708_v32  ;;  %v2134_v54 = vmul.f32 1.442695, %v2133_v60  ;;  %v1359_v30 = vpop.f32.mrf.mxu2  ;;  %v1193_v1 = vpop.f32.mrf.mxu0 }
 0x236   :  { %v1474_v16 = vmul.f32 %v3611_v44, %v1472_v25  ;;  %v1476_v41 = vmul.f32 %v3615_v47, %v1472_v25  ;;  %v2055_v42 = vmul.f32 %v2592_v53, %v2054_v40  ;;  %2599 = vpow2.f32 %v1541_v37  ;;  %v1424_v44 = vpop.f32.mrf.mxu3 }
 0x237   :  { %vm2057_vm14 = vweird.f32 %v3656_v19  ;;  %vm3730_vm15 = vcmp.eq.f32.partialorder %v2061_v63, 8.507059e+37  ;;  %2601 = vrcp.f32 %v3725_v35  ;;  %v2137_v8 = vmul.f32 1.442695, %v2136_v55 }
 0x238   :  { %v2598_v29 = vpop.eup %2597  ;;  %v1475_v14 = vmul.f32 %v1474_v16, %v3580_v61  ;;  %v1477_v0 = vmul.f32 %v1476_v41, %v3684_v48  ;;  %v2056_v12 = vadd.f32 %v2592_v53, %v2055_v42  ;;  %2603 = vpow2.f32 %v1544_v62  ;;  %vm2059_vm1 = vmor %vm2057_vm14, %vm2058_vm13  ;;  %v1286_v41 = vpop.f32.mrf.mxu1 }
 0x239   :  { %v2177_v47 = vsub.f32 %v3670_v3, %v2176_v23  ;;  %v2180_v50 = vsub.f32 %v3691_v43, %v2176_v23  ;;  %v2064_v19 = vor.u32 1.1754944e-38, %v2063_v38  ;;  %v1504_v13 = vmul.f32 %v2598_v29, %v3695_v39 }
 0x23a   :  { %v3741_v56 = vadd.f32 %v1477_v0, %v1475_v14  ;;  %v2060_v57 = vsel %vm2059_vm1, %v2592_v53, %v2056_v12  ;;  %v1512_v9 = vand.u32 2147483647, %v3695_v39  ;;  %2605 = vpow2.f32 %v2134_v54 }
 0x23b   :  { %v2065_v20 = vsel %vm3730_vm15, %v2064_v19, %v2060_v57  ;;  %v1505_v45 = vsub.f32 1.0, %v1504_v13  ;;  %2607 = vpow2.f32 %v2137_v8  ;;  %v1585_v3 = vmul.f32 1.442695, %v1584_v11  ;;  %v4176_v13 = vld [vmem:[#allocation8_spill] sm:$0xff] }
 0x23c   :  { %v3746_v49 = vpop.eup %2599  ;;  %v2067_v15 = vmul.f32 %v3631_v34, %v2065_v20  ;;  %v2069_v60 = vmul.f32 %v3643_v27, %v2065_v20  ;;  %vm1508_vm2 = vweird.f32 %v3695_v39  ;;  %v1514_v18 = vand.u32 2147483648, %v3695_v39 }
 0x23d   :  { %v2602_v58 = vpop.eup %2601  ;;  %v1506_v59 = vmul.f32 %v2598_v29, %v1505_v45  ;;  %vm1509_vm3 = vweird.f32 %v2598_v29  ;;  %2609 = vpow2.f32 %v1585_v3  ;;  %v1588_v5 = vmul.f32 1.442695, %v1587_v36  ;;  %v1363_v19 = vpop.f32.mrf.mxu2 }
 0x23e   :  { %v3755_v43 = vpop.eup %2603  ;;  %v2068_v11 = vmul.f32 %v2067_v15, %v3580_v61  ;;  %v2070_v34 = vmul.f32 %v2069_v60, %v3684_v48  ;;  %v2097_v27 = vmul.f32 %v2602_v58, %v3725_v35  ;;  %v2178_v31 = vmul.f32 1.442695, %v2177_v47  ;;  %vm1510_vm5 = vmor %vm1508_vm2, %vm1509_vm3  ;;  %v1428_v23 = vpop.f32.mrf.mxu3 }
 0x23f   :  { %v1507_v53 = vadd.f32 %v2598_v29, %v1506_v59  ;;  %vm1513_vm4 = vcmp.eq.f32.partialorder %v1512_v9, 8.507059e+37  ;;  %v3762_v55 = vadd.f32 %v3755_v43, %v3746_v49  ;;  %2611 = vpow2.f32 %v1588_v5  ;;  %v4178_v9 = vld [vmem:[#allocation9_spill] sm:$0xff] }
 0x240   :  { %v3764_v21 = vpop.eup %2605  ;;  %v3766_v24 = vadd.f32 %v2070_v34, %v2068_v11  ;;  %v1515_v61 = vor.u32 1.1754944e-38, %v1514_v18  ;;  %v2098_v2 = vsub.f32 1.0, %v2097_v27  ;;  %v2181_v48 = vmul.f32 1.442695, %v2180_v50 }
 0x241   :  { %v3771_v36 = vpop.eup %2607  ;;  %v1511_v52 = vsel %vm1510_vm5, %v2598_v29, %v1507_v53  ;;  %v2105_v6 = vand.u32 2147483647, %v3725_v35  ;;  %v2107_v37 = vand.u32 2147483648, %v3725_v35  ;;  %2613 = vrcp.f32 %v3762_v55  ;;  %v4181_v53 = vld [vmem:[#allocation18_spill] sm:$0xff] }
 0x242   :  { %v1516_v63 = vsel %vm1513_vm4, %v1515_v61, %v1511_v52  ;;  %v2099_v38 = vmul.f32 %v2602_v58, %v2098_v2  ;;  %vm2102_vm6 = vweird.f32 %v2602_v58  ;;  %2615 = vpow2.f32 %v2178_v31  ;;  %v4180_v31 = vld [vmem:[#allocation15_spill] sm:$0xff] }
 0x243   :  { %v3776_v39 = vpop.eup %2609  ;;  %v1425_v4 = vadd.f32 %v1424_v44, %v3712_v46  ;;  %v1518_v40 = vmul.f32 %v3673_v33, %v1516_v63  ;;  %v1520_v62 = vmul.f32 %v3680_v28, %v1516_v63  ;;  %v3783_v25 = vadd.f32 %v3771_v36, %v3764_v21 }
 0x244   :  { %v2100_v54 = vadd.f32 %v2602_v58, %v2099_v38  ;;  %vm2101_vm7 = vweird.f32 %v3725_v35  ;;  %v1194_v16 = vadd.f32 %v1193_v1, %v3668_v26  ;;  %2617 = vpow2.f32 %v2181_v48 }
 0x245   :  { %v3787_v42 = vpop.eup %2611  ;;  %v1519_v22 = vmul.f32 %v1518_v40, %v3652_v51  ;;  %v1521_v46 = vmul.f32 %v1520_v62, %v1425_v4  ;;  %vm2103_vm9 = vmor %vm2101_vm7, %vm2102_vm6  ;;  %v2108_v33 = vor.u32 1.1754944e-38, %v2107_v37  ;;  %2619 = vrcp.f32 %v3783_v25  ;;  %v95_v37 = vld [vmem:[#allocation2] sm:$0xff] }
 0x246   :  { %v2104_v28 = vsel %vm2103_vm9, %v2602_v58, %v2100_v54  ;;  %vm2106_vm10 = vcmp.eq.f32.partialorder %v2105_v6, 8.507059e+37  ;;  %v1281_v8 = vadd.f32 %v1280_v17, %v3704_v7  ;;  %v3795_v35 = vadd.f32 %v3787_v42, %v3776_v39  ;;  %v4177_v7 = vld [vmem:[#allocation10_spill] sm:$0xff]  ;;  %v4179_v17 = vld [vmem:[#allocation13_spill] sm:$0xff] }
 0x247   :  { %v2614_v26 = vpop.eup %2613  ;;  %v3797_v29 = vadd.f32 %v1521_v46, %v1519_v22  ;;  %v2109_v14 = vsel %vm2106_vm10, %v2108_v33, %v2104_v28  ;;  %v1287_v0 = vadd.f32 %v1286_v41, %v1194_v16  ;;  %v766_v57 = vadd.f32 %v4177_v7, %v4176_v13 }
 0x248   :  { %v3799_v12 = vpop.eup %2615  ;;  %v2111_v44 = vmul.f32 %v3708_v32, %v2109_v14  ;;  %v2113_v47 = vmul.f32 %v3714_v10, %v2109_v14  ;;  %v1548_v50 = vmul.f32 %v2614_v26, %v3762_v55  ;;  %v770_v20 = vadd.f32 %v4179_v17, %v4178_v9 }
 0x249   :  { %2621 = vrcp.f32 %v3795_v35  ;;  %v1360_v60 = vadd.f32 %v1359_v30, %v1281_v8  ;;  %v1556_v10 = vand.u32 2147483647, %v3762_v55  ;;  %v1558_v58 = vand.u32 2147483648, %v3762_v55 }
 0x24a   :  { %v3809_v45 = vpop.eup %2617  ;;  %v2112_v3 = vmul.f32 %v2111_v44, %v3652_v51  ;;  %v2114_v15 = vmul.f32 %v2113_v47, %v1425_v4  ;;  %v1549_v32 = vsub.f32 1.0, %v1548_v50  ;;  %v1364_v59 = vadd.f32 %v1363_v19, %v1287_v0  ;;  %v1432_v51 = vpop.f32.mrf.mxu3 }
 0x24b   :  { %v2620_v18 = vpop.eup %2619  ;;  %v3816_v5 = vadd.f32 %v3809_v45, %v3799_v12  ;;  %vm1553_vm11 = vweird.f32 %v2614_v26  ;;  %v835_v30 = vadd.f32 %v4180_v31, %v766_v57  ;;  %v3823_v61 = vadd.f32 %v4181_v53, %v770_v20 }
 0x24c   :  { %v3818_v11 = vadd.f32 %v2114_v15, %v2112_v3  ;;  %v1550_v34 = vmul.f32 %v2614_v26, %v1549_v32  ;;  %v2141_v27 = vmul.f32 %v2620_v18, %v3783_v25  ;;  %v2149_v2 = vand.u32 2147483647, %v3783_v25 }
 0x24d   :  { %2623 = vrcp.f32 %v3816_v5  ;;  %v1429_v48 = vadd.f32 %v1428_v23, %v1360_v60  ;;  %vm1552_vm12 = vweird.f32 %v3762_v55  ;;  %vm1557_vm14 = vcmp.eq.f32.partialorder %v1556_v10, 8.507059e+37 }
 0x24e   :  { %v1551_v52 = vadd.f32 %v2614_v26, %v1550_v34  ;;  %v2142_v6 = vsub.f32 1.0, %v2141_v27  ;;  %vm1554_vm13 = vmor %vm1552_vm12, %vm1553_vm11  ;;  %v1559_v63 = vor.u32 1.1754944e-38, %v1558_v58  ;;  %v2151_v38 = vand.u32 2147483648, %v3783_v25 }
 0x24f   :  { %v2622_v1 = vpop.eup %2621  ;;  %v3829_v4 = vadd.f32 %v1432_v51, %v1364_v59  ;;  %vm2146_vm15 = vweird.f32 %v2620_v18  ;;  %vm2145_vm1 = vweird.f32 %v3783_v25  ;;  %vm3833_vm2 = vcmp.eq.f32.partialorder %v2149_v2, 8.507059e+37 }
 0x250   :  { %v1555_v40 = vsel %vm1554_vm13, %v2614_v26, %v1551_v52  ;;  %v2143_v62 = vmul.f32 %v2620_v18, %v2142_v6  ;;  %v1592_v54 = vmul.f32 %v2622_v1, %v3795_v35  ;;  %v1632_v23 = vsel %vm278_vm8, %v95_v37, 0  ;;  %vm2147_vm3 = vmor %vm2145_vm1, %vm2146_vm15 }
 0x251   :  { %v1560_v16 = vsel %vm1557_vm14, %v1559_v63, %v1555_v40  ;;  %v2152_v8 = vor.u32 1.1754944e-38, %v2151_v38  ;;  %vm1597_vm4 = vweird.f32 %v2622_v1  ;;  %v1600_v26 = vand.u32 2147483647, %v3795_v35 }
 0x252   :  { %v1562_v41 = vmul.f32 %v3746_v49, %v1560_v16  ;;  %v1564_v22 = vmul.f32 %v3755_v43, %v1560_v16  ;;  %v2144_v46 = vadd.f32 %v2620_v18, %v2143_v62  ;;  %v1593_v33 = vsub.f32 1.0, %v1592_v54 }
 0x253   :  { %v2624_v28 = vpop.eup %2623  ;;  %v1602_v25 = vand.u32 2147483648, %v3795_v35  ;;  %vm1596_vm5 = vweird.f32 %v3795_v35  ;;  %v3846_v43 = vand.u32 4294901760, %v1632_v23  ;;  %vm1601_vm7 = vcmp.eq.f32.partialorder %v1600_v26, 8.507059e+37 }
 0x254   :  { %v1563_v14 = vmul.f32 %v1562_v41, %v835_v30  ;;  %v1565_v0 = vmul.f32 %v1564_v22, %v1429_v48  ;;  %v2148_v44 = vsel %vm2147_vm3, %v2620_v18, %v2144_v46  ;;  %v1594_v47 = vmul.f32 %v2622_v1, %v1593_v33  ;;  %vm1598_vm6 = vmor %vm1596_vm5, %vm1597_vm4  ;;  %v97_v46 = vld [vmem:[#allocation2 + $0x10] sm:$0xff] }
 0x255   :  { %v2153_v50 = vsel %vm3833_vm2, %v2152_v8, %v2148_v44  ;;  %v2185_v49 = vmul.f32 %v2624_v28, %v3816_v5  ;;  %v1603_v9 = vor.u32 1.1754944e-38, %v1602_v25  ;;  %v2193_v20 = vand.u32 2147483647, %v3816_v5 }
 0x256   :  { %v1566_v19 = vadd.f32 %v1565_v0, %v1563_v14  ;;  %v2155_v13 = vmul.f32 %v3764_v21, %v2153_v50  ;;  %v2157_v7 = vmul.f32 %v3771_v36, %v2153_v50  ;;  %v1595_v57 = vadd.f32 %v2622_v1, %v1594_v47  ;;  %v96_v36 = vld [vmem:[#allocation2 + $0x8] sm:$0xff] }
 0x257   :  { %v2186_v17 = vsub.f32 1.0, %v2185_v49  ;;  %v2195_v60 = vand.u32 2147483648, %v3816_v5  ;;  %vm2190_vm9 = vweird.f32 %v2624_v28  ;;  %v3854_v21 = vsub.f32 %v1632_v23, %v3846_v43 }
 0x258   :  { %v2156_v3 = vmul.f32 %v2155_v13, %v835_v30  ;;  %v2158_v15 = vmul.f32 %v2157_v7, %v1429_v48  ;;  %v1599_v35 = vsel %vm1598_vm6, %v2622_v1, %v1595_v57  ;;  %v3856_v10 = vand.u32 4294901760, %v1566_v19 }
 0x259   :  { %v1604_v32 = vsel %vm1601_vm7, %v1603_v9, %v1599_v35  ;;  %v2187_v18 = vmul.f32 %v2624_v28, %v2186_v17  ;;  %vm2189_vm10 = vweird.f32 %v3816_v5  ;;  %v2196_v30 = vor.u32 1.1754944e-38, %v2195_v60  ;;  %v98_v60 = vld [vmem:[#allocation2 + $0x18] sm:$0xff] }
 0x25a   :  { %v2159_v58 = vadd.f32 %v2158_v15, %v2156_v3  ;;  %v1606_v59 = vmul.f32 %v3776_v39, %v1604_v32  ;;  %v1608_v34 = vmul.f32 %v3787_v42, %v1604_v32  ;;  %vm2191_vm11 = vmor %vm2189_vm10, %vm2190_vm9  ;;  %v1635_v53 = vsel %vm278_vm8, %v96_v36, 0 }
 0x25b   :  { %v2188_v27 = vadd.f32 %v2624_v28, %v2187_v18  ;;  %vm2194_vm12 = vcmp.eq.f32.partialorder %v2193_v20, 8.507059e+37  ;;  %v3865_v48 = vand.u32 4294901760, %v3854_v21  ;;  %v3868_v39 = vand.u32 4294901760, %v3797_v29 }
 0x25c   :  { %v1607_v51 = vmul.f32 %v1606_v59, %v3823_v61  ;;  %v1609_v31 = vmul.f32 %v1608_v34, %v3829_v4  ;;  %v1715_v5 = vsub.f32 %v1566_v19, %v3856_v10  ;;  %v3871_v6 = vand.u32 4294901760, %v2159_v58 }
 0x25d   :  { %v2192_v2 = vsel %vm2191_vm11, %v2624_v28, %v2188_v27  ;;  %v3875_v63 = vand.u32 4294901760, %v1635_v53  ;;  %v3878_v38 = vand.u32 4294901760, %v3741_v56  ;;  %v3883_v62 = vand.u32 4294901760, %v3818_v11 }
 0x25e   :  { %v1610_v42 = vadd.f32 %v1609_v31, %v1607_v51  ;;  %v2197_v52 = vsel %vm2194_vm12, %v2196_v30, %v2192_v2  ;;  %v1666_v55 = vsub.f32 %v3854_v21, %v3865_v48  ;;  %v1721_v23 = vsub.f32 %v3797_v29, %v3868_v39 }
 0x25f   :  { %v2199_v37 = vmul.f32 %v3799_v12, %v2197_v52  ;;  %v2201_v1 = vmul.f32 %v3809_v45, %v2197_v52  ;;  %v3890_v12 = vand.u32 4294901760, %v3766_v24  ;;  %v3898_v41 = vsub.f32 %v2159_v58, %v3871_v6 }
 0x260   :  { %v3880_v40 = vand.u32 4294901760, %v1610_v42  ;;  %v3901_v22 = vsub.f32 %v1635_v53, %v3875_v63  ;;  %v1727_v28 = vsub.f32 %v3741_v56, %v3878_v38  ;;  %v3908_v8 = vsub.f32 %v3818_v11, %v3883_v62 }
 0x261   :  { %v2200_v54 = vmul.f32 %v2199_v37, %v3823_v61  ;;  %v2202_v16 = vmul.f32 %v2201_v1, %v3829_v4  ;;  %v1716_v4 = vand.u32 4294901760, %v1715_v5  ;;  %v3913_v26 = vand.u32 4294901760, %v1666_v55 }
 0x262   :  { %v1709_v45 = vsub.f32 %v1610_v42, %v3880_v40  ;;  %1656 = vmatpush.msrb.mxu0 %v3880_v40  ;;  %1807 = vmatpush.msrb.mxu3 %v3880_v40  ;;  %v3917_v25 = vsub.f32 %v3766_v24, %v3890_v12  ;;  %v1722_v0 = vand.u32 4294901760, %v1721_v23  ;;  %v1638_v56 = vsel %vm278_vm8, %v97_v46, 0 }
 0x263   :  { %v2203_v61 = vadd.f32 %v2202_v16, %v2200_v54  ;;  %v1717_v44 = vsub.f32 %v1715_v5, %v1716_v4  ;;  %v2277_v47 = vand.u32 4294901760, %v3898_v41  ;;  %v3925_v50 = vand.u32 4294901760, %v3901_v22 }
 0x264   :  { %1658 = vmatpush.msrb.mxu0 %v3856_v10  ;;  %1763 = vmatpush.msrb.mxu2 %v1709_v45  ;;  %v1710_v33 = vand.u32 4294901760, %v1709_v45  ;;  %v1728_v49 = vand.u32 4294901760, %v1727_v28  ;;  %v2283_v13 = vand.u32 4294901760, %v3908_v8  ;;  %v1723_v7 = vsub.f32 %v1721_v23, %v1722_v0 }
 0x265   :  { %v3910_v29 = vand.u32 4294901760, %v2203_v61  ;;  %1809 = vmatpush.msrb.mxu3 %v3856_v10  ;;  %v2289_v57 = vand.u32 4294901760, %v3917_v25  ;;  %v3932_v9 = vand.u32 4294901760, %v1638_v56  ;;  %v1718_v20 = vand.u32 4294901760, %v1717_v44 }
 0x266   :  { %1660 = vmatpush.msrb.mxu0 %v3868_v39  ;;  %1766 = vmatpush.msrb.mxu2 %v1715_v5  ;;  %v1711_v14 = vsub.f32 %v1709_v45, %v1710_v33  ;;  %v2278_v3 = vsub.f32 %v3898_v41, %v2277_v47  ;;  %v1674_v15 = vsub.f32 %v3901_v22, %v3925_v50  ;;  %v1724_v36 = vand.u32 4294901760, %v1723_v7 }
 0x267   :  { %v2270_v11 = vsub.f32 %v2203_v61, %v3910_v29  ;;  %1811 = vmatpush.msrb.mxu3 %v3868_v39  ;;  %v1729_v35 = vsub.f32 %v1727_v28, %v1728_v49  ;;  %v2284_v18 = vsub.f32 %v3908_v8, %v2283_v13  ;;  %v3944_v58 = vsub.f32 %v1638_v56, %v3932_v9 }
 0x268   :  { %1662 = vmatpush.msrb.mxu0 %v3878_v38  ;;  %1769 = vmatpush.msrb.mxu2 %v1721_v23  ;;  %v1712_v24 = vand.u32 4294901760, %v1711_v14  ;;  %v2279_v59 = vand.u32 4294901760, %v2278_v3  ;;  %v2290_v34 = vsub.f32 %v3917_v25, %v2289_v57  ;;  %v1675_v27 = vand.u32 4294901760, %v1674_v15 }
 0x269   :  { %1813 = vmatpush.msrb.mxu3 %v3878_v38  ;;  %1668 = vmatmul.f32.vlgmr.msrb.gmra.mxu0 %v3913_v26  ;;  %v2271_v19 = vand.u32 4294901760, %v2270_v11  ;;  %v1641_v51 = vsel %vm278_vm8, %v98_v60, 0  ;;  %v1730_v31 = vand.u32 4294901760, %v1729_v35  ;;  %v2285_v30 = vand.u32 4294901760, %v2284_v18 }
 0x26a   :  { %1854 = vmatpush.msra.mxu0 %v1710_v33  ;;  %1713 = vmatpush.msrb.mxu1 %v1712_v24  ;;  %v3951_v53 = vand.u32 4294901760, %v3944_v58  ;;  %v3953_v2 = vand.u32 4294901760, %v1641_v51  ;;  %v2291_v42 = vand.u32 4294901760, %v2290_v34 }
 0x26b   :  { %1772 = vmatpush.msrb.mxu2 %v1727_v28  ;;  %v2272_v17 = vsub.f32 %v2270_v11, %v2271_v19  ;;  %1817 = vmatmul.f32.vlgmr.msrb.gmra.mxu3 %v3865_v48  ;;  %v1619_v28 = vpop.permute.xlu0 %1618 }
 0x26c   :  { %1775 = vmatmul.f32.vlgmr.msrb.gmra.mxu2 %v3854_v21  ;;  %1858 = vmatpush.msra.mxu0 %v1716_v4  ;;  %v1682_v52 = vsub.f32 %v3944_v58, %v3951_v53  ;;  %v1688_v5 = vsub.f32 %v1641_v51, %v3953_v2 }
 0x26d   :  { %v2273_v32 = vand.u32 4294901760, %v2272_v17  ;;  %2217 = vmatpush.msra.mxu2 %v3910_v29  ;;  %1719 = vmatpush.msrb.mxu1 %v1718_v20 }
 0x26e   :  { %1862 = vmatpush.msra.mxu0 %v1722_v0  ;;  %v1683_v37 = vand.u32 4294901760, %v1682_v52  ;;  %v1689_v1 = vand.u32 4294901760, %v1688_v5 }
 0x26f   :  { %2274 = vmatpush.msra.mxu3 %v2273_v32  ;;  %2219 = vmatpush.msra.mxu2 %v3871_v6 }
 0x270   :  { %1725 = vmatpush.msrb.mxu1 %v1724_v36  ;;  %1866 = vmatpush.msra.mxu0 %v1728_v49 }
 0x271   :  { %2280 = vmatpush.msra.mxu3 %v2279_v59  ;;  %2221 = vmatpush.msra.mxu2 %v3883_v62 }
 0x272   :  { %1731 = vmatpush.msrb.mxu1 %v1730_v31  ;;  %2324 = vmatpush.msrb.mxu0 %v2270_v11 }
 0x273   :  { %2286 = vmatpush.msra.mxu3 %v2285_v30  ;;  %1676 = vmatmul.f32.gmra.mxu0 %v1675_v27 }
 0x274   :  { %1733 = vmatmul.f32.vlgmr.msrb.gmra.mxu1 %v3846_v43  ;;  %2223 = vmatpush.msra.mxu2 %v3890_v12 }
 0x275   :  { %2292 = vmatpush.msra.mxu3 %v2291_v42  ;;  %1897 = vmatpush.msra.mxu1 %v3880_v40 }
 0x276   :  { %2327 = vmatpush.msrb.mxu0 %v3898_v41  ;;  %2415 = vmatpush.msrb.mxu2 %v2271_v19 }
 0x277   :  { %2458 = vmatpush.msrb.mxu3 %v3910_v29  ;;  %1899 = vmatpush.msra.mxu1 %v3856_v10  ;;  %v1690_v10 = vsub.f32 %v1688_v5, %v1689_v1 }
 0x278   :  { %1780 = vmatmul.f32.gmra.mxu2 %v3901_v22  ;;  %2330 = vmatpush.msrb.mxu0 %v3908_v8 }
 0x279   :  { %2460 = vmatpush.msrb.mxu3 %v3871_v6  ;;  %2419 = vmatpush.msrb.mxu2 %v2277_v47 }
 0x27a   :  { %1823 = vmatmul.f32.gmra.mxu3 %v3925_v50  ;;  %1901 = vmatpush.msra.mxu1 %v3868_v39  ;;  %v1691_v39 = vand.u32 4294901760, %v1690_v10 }
 0x27b   :  { %2462 = vmatpush.msrb.mxu3 %v3883_v62  ;;  %2333 = vmatpush.msrb.mxu0 %v3917_v25  ;;  %v4015_v25 = vpop.permute.xlu1 %1623 }
 0x27c   :  { %2423 = vmatpush.msrb.mxu2 %v2283_v13  ;;  %1903 = vmatpush.msra.mxu1 %v3878_v38 }
 0x27d   :  { %2464 = vmatpush.msrb.mxu3 %v3890_v12  ;;  %1684 = vmatmul.f32.gmra.mxu0 %v1683_v37 }
 0x27e   :  { %2368 = vmatpush.msrb.mxu1 %v3910_v29  ;;  %2427 = vmatpush.msrb.mxu2 %v2289_v57 }
 0x27f   :  { %1737 = vmatmul.f32.gmra.mxu1 %v3875_v63 }
 0x280   :  { %2370 = vmatpush.msrb.mxu1 %v3871_v6  ;;  %1785 = vmatmul.f32.gmra.mxu2 %v3944_v58 }
 0x282   :  { %2372 = vmatpush.msrb.mxu1 %v3883_v62  ;;  %1829 = vmatmul.f32.gmra.mxu3 %v3951_v53 }
 0x284   :  { %2374 = vmatpush.msrb.mxu1 %v3890_v12 }
 0x285   :  { %1692 = vmatmul.f32.gmra.mxu0 %v1691_v39 }
 0x287   :  { %1741 = vmatmul.f32.gmra.mxu1 %v3932_v9 }
 0x288   :  { %1790 = vmatmul.f32.gmra.mxu2 %v1688_v5 }
 0x28a   :  { %1835 = vmatmul.f32.gmra.mxu3 %v1689_v1 }
 0x28d   :  { %1868 = vmatmul.f32.vlgmr.msra.gmra.mxu0 %v3846_v43 }
 0x28f   :  { %1745 = vmatmul.f32.gmra.mxu1 %v3953_v2 }
 0x290   :  { %2229 = vmatmul.f32.vlgmr.msra.gmra.mxu2 %v3913_v26 }
 0x292   :  { %2294 = vmatmul.f32.vlgmr.msra.gmra.mxu3 %v3846_v43 }
 0x295   :  { %1872 = vmatmul.f32.gmra.mxu0 %v3875_v63 }
 0x297   :  { %1905 = vmatmul.f32.vlgmr.msra.gmra.mxu1 %v3846_v43 }
 0x298   :  { %2237 = vmatmul.f32.gmra.mxu2 %v1675_v27 }
 0x29a   :  { %2298 = vmatmul.f32.gmra.mxu3 %v3875_v63 }
 0x29d   :  { %1876 = vmatmul.f32.gmra.mxu0 %v3932_v9 }
 0x29f   :  { %1909 = vmatmul.f32.gmra.mxu1 %v3875_v63 }
 0x2a0   :  { %2245 = vmatmul.f32.gmra.mxu2 %v1683_v37 }
 0x2a2   :  { %2302 = vmatmul.f32.gmra.mxu3 %v3932_v9 }
 0x2a5   :  { %1880 = vmatmul.f32.gmra.mxu0 %v3953_v2 }
 0x2a7   :  { %1913 = vmatmul.f32.gmra.mxu1 %v3932_v9 }
 0x2a8   :  { %2253 = vmatmul.f32.gmra.mxu2 %v1691_v39 }
 0x2aa   :  { %2306 = vmatmul.f32.gmra.mxu3 %v3953_v2 }
 0x2ad   :  { %2336 = vmatmul.f32.vlgmr.msrb.gmra.mxu0 %v3854_v21 }
 0x2af   :  { %1917 = vmatmul.f32.gmra.mxu1 %v3953_v2 }
 0x2b0   :  { %2429 = vmatmul.f32.vlgmr.msrb.gmra.mxu2 %v3846_v43 }
 0x2b2   :  { %2466 = vmatmul.f32.vlgmr.msrb.gmra.mxu3 %v3846_v43 }
 0x2b5   :  { %2341 = vmatmul.f32.gmra.mxu0 %v3901_v22  ;;  %v4011_v22 = vpop.permute.xlu2 %1613 }
 0x2b7   :  { %2378 = vmatmul.f32.vlgmr.msrb.gmra.mxu1 %v3865_v48 }
 0x2b8   :  { %2433 = vmatmul.f32.gmra.mxu2 %v3875_v63 }
 0x2ba   :  { %2470 = vmatmul.f32.gmra.mxu3 %v3875_v63 }
 0x2bd   :  { %2346 = vmatmul.f32.gmra.mxu0 %v3944_v58  ;;  %v4019_v57 = vpop.permute.xlu2 %1628 }
 0x2bf   :  { %2384 = vmatmul.f32.gmra.mxu1 %v3925_v50 }
 0x2c0   :  { %2437 = vmatmul.f32.gmra.mxu2 %v3932_v9 }
 0x2c2   :  { %2474 = vmatmul.f32.gmra.mxu3 %v3932_v9 }
 0x2c5   :  { %2351 = vmatmul.f32.gmra.mxu0 %v1688_v5 }
 0x2c7   :  { %2390 = vmatmul.f32.gmra.mxu1 %v3951_v53 }
 0x2c8   :  { %2441 = vmatmul.f32.gmra.mxu2 %v3953_v2 }
 0x2ca   :  { %2478 = vmatmul.f32.gmra.mxu3 %v3953_v2 }
 0x2cf   :  { %2396 = vmatmul.f32.gmra.mxu1 %v1689_v1 }
 0x2e6   :  { %v1669_v43 = vpop.f32.mrf.mxu0 }
 0x2e7   :  { %v1670_v14 = vadd.f32 %v1669_v43, %v4011_v22 }
 0x2ee   :  { %v1818_v63 = vpop.f32.mrf.mxu3 }
 0x2ef   :  { %v1776_v48 = vpop.f32.mrf.mxu2 }
 0x2f0   :  { %v1677_v21 = vpop.f32.mrf.mxu0 }
 0x2f1   :  { %v1734_v6 = vpop.f32.mrf.mxu1  ;;  %v1678_v29 = vadd.f32 %v1677_v21, %v1619_v28 }
 0x2f2   :  { %v1735_v11 = vadd.f32 %v1734_v6, %v1670_v14 }
 0x2f4   :  { %v1777_v19 = vadd.f32 %v1776_v48, %v1735_v11 }
 0x2f6   :  { %v1819_v20 = vadd.f32 %v1818_v63, %v1777_v19 }
 0x2fa   :  { %v1685_v38 = vpop.f32.mrf.mxu0 }
 0x2fb   :  { %v1781_v40 = vpop.f32.mrf.mxu2  ;;  %v1686_v0 = vadd.f32 %v1685_v38, %v4015_v25 }
 0x2fc   :  { %v1738_v62 = vpop.f32.mrf.mxu1 }
 0x2fd   :  { %v1824_v54 = vpop.f32.mrf.mxu3  ;;  %v1739_v56 = vadd.f32 %v1738_v62, %v1678_v29 }
 0x2ff   :  { %v1782_v47 = vadd.f32 %v1781_v40, %v1739_v56 }
 0x301   :  { %v1825_v9 = vadd.f32 %v1824_v54, %v1782_v47 }
 0x302   :  { %v1693_v16 = vpop.f32.mrf.mxu0 }
 0x303   :  { %v1786_v55 = vpop.f32.mrf.mxu2  ;;  %v1694_v17 = vadd.f32 %v1693_v16, %v4019_v57 }
 0x304   :  { %v1742_v12 = vpop.f32.mrf.mxu1 }
 0x305   :  { %v1830_v45 = vpop.f32.mrf.mxu3  ;;  %v1743_v44 = vadd.f32 %v1742_v12, %v1686_v0 }
 0x307   :  { %v1787_v13 = vadd.f32 %v1786_v55, %v1743_v44 }
 0x309   :  { %v1831_v3 = vadd.f32 %v1830_v45, %v1787_v13 }
 0x30a   :  { %v1869_v41 = vpop.f32.mrf.mxu0 }
 0x30b   :  { %v1791_v23 = vpop.f32.mrf.mxu2  ;;  %v1870_v60 = vadd.f32 %v1869_v41, %v1819_v20 }
 0x30c   :  { %v1746_v61 = vpop.f32.mrf.mxu1 }
 0x30d   :  { %v1836_v4 = vpop.f32.mrf.mxu3  ;;  %v1747_v15 = vadd.f32 %v1746_v61, %v1694_v17 }
 0x30f   :  { %v1792_v34 = vadd.f32 %v1791_v23, %v1747_v15 }
 0x311   :  { %v1837_v53 = vadd.f32 %v1836_v4, %v1792_v34 }
 0x312   :  { %v1873_v46 = vpop.f32.mrf.mxu0 }
 0x313   :  { %v2230_v33 = vpop.f32.mrf.mxu2  ;;  %v1874_v35 = vadd.f32 %v1873_v46, %v1825_v9  ;;  %v4184_v9 = vld [vmem:[#allocation5_spill] sm:$0xff] }
 0x314   :  { %v1906_v8 = vpop.f32.mrf.mxu1  ;;  %v2231_v4 = vadd.f32 %v2230_v33, %v4011_v22 }
 0x315   :  { %v4013_v26 = vpop.f32.mrf.mxu3  ;;  %v1907_v27 = vadd.f32 %v1906_v8, %v1870_v60 }
 0x316   :  { %v2296_v56 = vadd.f32 %v4013_v26, %v2231_v4 }
 0x317   :  { %v1921_v2 = vadd.f32 %v1907_v27, %v1907_v27 }
 0x319   :  { %v1925_v39 = vsel %vm107_vm0, %v1921_v2, 0.0 }
 0x31a   :  { %v1877_v50 = vpop.f32.mrf.mxu0 }
 0x31b   :  { %v2238_v24 = vpop.f32.mrf.mxu2  ;;  %v1878_v32 = vadd.f32 %v1877_v50, %v1831_v3 }
 0x31c   :  { %v1910_v49 = vpop.f32.mrf.mxu1  ;;  %v2239_v41 = vadd.f32 %v2238_v24, %v1619_v28 }
 0x31d   :  { %v2299_v7 = vpop.f32.mrf.mxu3  ;;  %v1911_v18 = vadd.f32 %v1910_v49, %v1874_v35 }
 0x31e   :  { %v2300_v8 = vadd.f32 %v2299_v7, %v2239_v41 }
 0x31f   :  { %v1922_v30 = vadd.f32 %v1911_v18, %v1911_v18 }
 0x321   :  { %v1926_v52 = vsel %vm107_vm0, %v1922_v30, 0.0 }
 0x322   :  { %v1881_v36 = vpop.f32.mrf.mxu0  ;;  %v1927_v6 = vadd.f32 %v1926_v52, %v1925_v39 }
 0x323   :  { %v2246_v58 = vpop.f32.mrf.mxu2  ;;  %v1882_v5 = vadd.f32 %v1881_v36, %v1837_v53 }
 0x324   :  { %v1914_v59 = vpop.f32.mrf.mxu1  ;;  %v2247_v11 = vadd.f32 %v2246_v58, %v4015_v25 }
 0x325   :  { %v1915_v51 = vadd.f32 %v1914_v59, %v1878_v32  ;;  %v2303_v31 = vpop.f32.mrf.mxu3 }
 0x326   :  { %v2304_v24 = vadd.f32 %v2303_v31, %v2247_v11 }
 0x327   :  { %v1923_v42 = vadd.f32 %v1915_v51, %v1915_v51 }
 0x329   :  { %v1928_v43 = vsel %vm107_vm0, %v1923_v42, 0.0 }
 0x32a   :  { %v2337_v1 = vpop.f32.mrf.mxu0  ;;  %v1929_v38 = vadd.f32 %v1928_v43, %v1927_v6 }
 0x32b   :  { %v2254_v37 = vpop.f32.mrf.mxu2  ;;  %v2338_v19 = vadd.f32 %v2337_v1, %v2296_v56 }
 0x32c   :  { %v1918_v10 = vpop.f32.mrf.mxu1  ;;  %v2255_v18 = vadd.f32 %v2254_v37, %v4019_v57 }
 0x32d   :  { %v1919_v21 = vadd.f32 %v1918_v10, %v1882_v5  ;;  %v2307_v48 = vpop.f32.mrf.mxu3 }
 0x32e   :  { %v2308_v5 = vadd.f32 %v2307_v48, %v2255_v18 }
 0x32f   :  { %v1924_v63 = vadd.f32 %v1919_v21, %v1919_v21 }
 0x331   :  { %v1930_v40 = vsel %vm107_vm0, %v1924_v63, 0.0 }
 0x332   :  { %v1931_v62 = vadd.f32 %v1930_v40, %v1929_v38  ;;  %v2342_v55 = vpop.f32.mrf.mxu0 }
 0x333   :  { %v2430_v54 = vpop.f32.mrf.mxu2  ;;  %v2343_v44 = vadd.f32 %v2342_v55, %v2300_v8 }
 0x334   :  { %v1932_v16 = vrot.slane %v1931_v62, 4  ;;  %v2379_v12 = vpop.f32.mrf.mxu1 }
 0x335   :  { %v2467_v45 = vpop.f32.mrf.mxu3  ;;  %v2380_v17 = vadd.f32 %v2379_v12, %v2338_v19  ;;  %v4056_v19 = vpop.permute.xlu0 %1978 }
 0x336   :  { %v1933_v23 = vadd.f32 %v1932_v16, %v1931_v62 }
 0x337   :  { %v2431_v36 = vadd.f32 %v2430_v54, %v2380_v17 }
 0x338   :  { %v1934_v61 = vrot.slane %v1933_v23, 2 }
 0x339   :  { %v2468_v1 = vadd.f32 %v2467_v45, %v2431_v36  ;;  %v4069_v36 = vpop.permute.xlu2 %1988 }
 0x33a   :  { %v1935_v46 = vadd.f32 %v1934_v61, %v1933_v23  ;;  %v2347_v49 = vpop.f32.mrf.mxu0 }
 0x33b   :  { %v2434_v29 = vpop.f32.mrf.mxu2  ;;  %v2348_v26 = vadd.f32 %v2347_v49, %v2304_v24  ;;  %v2482_v38 = vadd.f32 %v2468_v1, %v2468_v1 }
 0x33c   :  { %v1936_v14 = vrot.slane %v1935_v46, 1  ;;  %v2385_v0 = vpop.f32.mrf.mxu1 }
 0x33d   :  { %v2471_v47 = vpop.f32.mrf.mxu3  ;;  %v2386_v13 = vadd.f32 %v2385_v0, %v2343_v44  ;;  %v2486_v48 = vsel %vm107_vm0, %v2482_v38, 0.0 }
 0x33e   :  { %v1937_v50 = vadd.f32 %v1936_v14, %v1935_v46 }
 0x33f   :  { %v2435_v25 = vadd.f32 %v2434_v29, %v2386_v13 }
 0x340   :  { %v1938_v28 = vmul.f32 %v1937_v50, %v4184_v9 }
 0x342   :  { %v4030_v22 = vsub.f32 %v1921_v2, %v1938_v28  ;;  %v4032_v33 = vsub.f32 %v1922_v30, %v1938_v28  ;;  %v4034_v7 = vsub.f32 %v1923_v42, %v1938_v28  ;;  %v4036_v20 = vsub.f32 %v1924_v63, %v1938_v28  ;;  %v2352_v42 = vpop.f32.mrf.mxu0  ;;  %v4058_v28 = vpop.permute.xlu1 %1983 }
 0x343   :  { %v2438_v3 = vpop.f32.mrf.mxu2  ;;  %v2472_v30 = vadd.f32 %v2471_v47, %v2435_v25  ;;  %v2353_v43 = vadd.f32 %v2352_v42, %v2308_v5 }
 0x344   :  { %v1943_v15 = vmul.f32 %v4030_v22, %v4030_v22  ;;  %v1944_v35 = vmul.f32 %v4032_v33, %v4032_v33  ;;  %v1945_v60 = vmul.f32 %v4034_v7, %v4034_v7  ;;  %v2391_v32 = vpop.f32.mrf.mxu1  ;;  %v1946_v34 = vmul.f32 %v4036_v20, %v4036_v20 }
 0x345   :  { %v2392_v58 = vadd.f32 %v2391_v32, %v2348_v26  ;;  %v2475_v59 = vpop.f32.mrf.mxu3  ;;  %v2483_v39 = vadd.f32 %v2472_v30, %v2472_v30 }
 0x346   :  { %v1947_v27 = vsel %vm107_vm0, %v1943_v15, 0.0  ;;  %v1948_v51 = vsel %vm107_vm0, %v1944_v35, 0.0  ;;  %v1950_v2 = vsel %vm107_vm0, %v1945_v60, 0.0  ;;  %v1952_v37 = vsel %vm107_vm0, %v1946_v34, 0.0 }
 0x347   :  { %v1949_v31 = vadd.f32 %v1948_v51, %v1947_v27  ;;  %v2439_v53 = vadd.f32 %v2438_v3, %v2392_v58  ;;  %v2487_v55 = vsel %vm107_vm0, %v2483_v39, 0.0  ;;  %v4071_v58 = vpop.permute.xlu0 %1993 }
 0x348   :  { %v2488_v61 = vadd.f32 %v2487_v55, %v2486_v48 }
 0x349   :  { %v1951_v52 = vadd.f32 %v1950_v2, %v1949_v31  ;;  %v2476_v57 = vadd.f32 %v2475_v59, %v2439_v53 }
 0x34a   :  { %v2003_v31 = vpop.permute.xlu1 %2002 }
 0x34b   :  { %v1953_v10 = vadd.f32 %v1952_v37, %v1951_v52  ;;  %v2442_v6 = vpop.f32.mrf.mxu2  ;;  %v2484_v40 = vadd.f32 %v2476_v57, %v2476_v57 }
 0x34c   :  { %v2397_v21 = vpop.f32.mrf.mxu1 }
 0x34d   :  { %v1954_v63 = vrot.slane %v1953_v10, 4  ;;  %v2398_v62 = vadd.f32 %v2397_v21, %v2353_v43  ;;  %v2479_v54 = vpop.f32.mrf.mxu3  ;;  %v2489_v45 = vsel %vm107_vm0, %v2484_v40, 0.0 }
 0x34e   :  { %v2490_v8 = vadd.f32 %v2489_v45, %v2488_v61 }
 0x34f   :  { %v1955_v16 = vadd.f32 %v1954_v63, %v1953_v10  ;;  %v2443_v12 = vadd.f32 %v2442_v6, %v2398_v62  ;;  %v2013_v55 = vpop.permute.xlu0 %2012 }
 0x351   :  { %v1956_v23 = vrot.slane %v1955_v16, 2  ;;  %v2480_v41 = vadd.f32 %v2479_v54, %v2443_v12 }
 0x353   :  { %v1957_v4 = vadd.f32 %v1956_v23, %v1955_v16  ;;  %v2485_v46 = vadd.f32 %v2480_v41, %v2480_v41  ;;  %v2008_v16 = vpop.permute.xlu2 %2007  ;;  %v2018_v23 = vpop.permute.xlu1 %2017 }
 0x355   :  { %v1958_v29 = vrot.slane %v1957_v4, 1  ;;  %v2491_v14 = vsel %vm107_vm0, %v2485_v46, 0.0 }
 0x356   :  { %v2492_v0 = vadd.f32 %v2491_v14, %v2490_v8 }
 0x357   :  { %v1959_v56 = vadd.f32 %v1958_v29, %v1957_v4 }
 0x358   :  { %v2493_v11 = vrot.slane %v2492_v0, 4 }
 0x359   :  { %v1960_v44 = vmul.f32 %v1959_v56, %v4184_v9 }
 0x35a   :  { %v2494_v47 = vadd.f32 %v2493_v11, %v2492_v0 }
 0x35b   :  { %v1961_v50 = vadd.f32 1e-05, %v1960_v44 }
 0x35c   :  { %v2495_v49 = vrot.slane %v2494_v47, 2 }
 0x35d   :  { %2625 = vrsqrt.f32 %v1961_v50  ;;  %vm1968_vm13 = vweird.f32 %v1961_v50 }
 0x35e   :  { %v2496_v13 = vadd.f32 %v2495_v49, %v2494_v47 }
 0x360   :  { %v2497_v24 = vrot.slane %v2496_v13, 1 }
 0x362   :  { %v2498_v17 = vadd.f32 %v2497_v24, %v2496_v13 }
 0x363   :  { %v2626_v26 = vpop.eup %2625 }
 0x364   :  { %v1963_v25 = vmul.f32 %v2626_v26, %v1961_v50  ;;  %v2499_v3 = vmul.f32 %v2498_v17, %v4184_v9  ;;  %vm1969_vm8 = vweird.f32 %v2626_v26 }
 0x365   :  { %vm1970_vm14 = vmor %vm1968_vm13, %vm1969_vm8 }
 0x366   :  { %v1964_v15 = vmul.f32 %v2626_v26, %v1963_v25  ;;  %v4061_v35 = vsub.f32 %v2482_v38, %v2499_v3  ;;  %v4063_v60 = vsub.f32 %v2483_v39, %v2499_v3  ;;  %v4065_v32 = vsub.f32 %v2484_v40, %v2499_v3 }
 0x367   :  { %v4067_v18 = vsub.f32 %v2485_v46, %v2499_v3 }
 0x368   :  { %v1965_v59 = vmul.f32 0.5, %v1964_v15  ;;  %v2504_v34 = vmul.f32 %v4061_v35, %v4061_v35  ;;  %v2505_v27 = vmul.f32 %v4063_v60, %v4063_v60  ;;  %v2506_v51 = vmul.f32 %v4065_v32, %v4065_v32 }
 0x369   :  { %v2507_v53 = vmul.f32 %v4067_v18, %v4067_v18 }
 0x36a   :  { %v1966_v30 = vsub.f32 1.5, %v1965_v59  ;;  %v2508_v2 = vsel %vm107_vm0, %v2504_v34, 0.0  ;;  %v2509_v42 = vsel %vm107_vm0, %v2505_v27, 0.0  ;;  %v2511_v1 = vsel %vm107_vm0, %v2506_v51, 0.0 }
 0x36b   :  { %v2510_v52 = vadd.f32 %v2509_v42, %v2508_v2  ;;  %v2513_v10 = vsel %vm107_vm0, %v2507_v53, 0.0 }
 0x36c   :  { %v1967_v5 = vmul.f32 %v2626_v26, %v1966_v30 }
 0x36d   :  { %v2512_v57 = vadd.f32 %v2511_v1, %v2510_v52 }
 0x36e   :  { %v1971_v37 = vsel %vm1970_vm14, %v2626_v26, %v1967_v5 }
 0x36f   :  { %v1972_v39 = vmul.f32 %v1971_v37, %v4030_v22  ;;  %v1973_v43 = vmul.f32 %v1971_v37, %v4032_v33  ;;  %v1974_v21 = vmul.f32 %v1971_v37, %v4034_v7  ;;  %v1975_v6 = vmul.f32 %v1971_v37, %v4036_v20 }
 0x370   :  { %v2514_v63 = vadd.f32 %v2513_v10, %v2512_v57 }
 0x371   :  { %v1996_v38 = vmul.f32 %v4056_v19, %v1972_v39  ;;  %v1997_v40 = vmul.f32 %v4058_v28, %v1973_v43  ;;  %v1998_v62 = vmul.f32 %v4069_v36, %v1974_v21  ;;  %v1999_v54 = vmul.f32 %v4071_v58, %v1975_v6 }
 0x372   :  { %v2515_v12 = vrot.slane %v2514_v63, 4 }
 0x373   :  { %v2020_v22 = vadd.f32 %v2003_v31, %v1996_v38  ;;  %v2021_v48 = vadd.f32 %v2008_v16, %v1997_v40  ;;  %v2022_v33 = vadd.f32 %v2013_v55, %v1998_v62  ;;  %v2023_v45 = vadd.f32 %v2018_v23, %v1999_v54 }
 0x374   :  { %v2516_v7 = vadd.f32 %v2515_v12, %v2514_v63 }
 0x375   :  { %2024 = vst.msk [vmem:[%s4144_s10] sm:$0xff] %vm107_vm0, %v2020_v22 }
 0x376   :  { %2025 = vst.msk [vmem:[%s4144_s10 + $0x8] sm:$0xff] %vm107_vm0, %v2021_v48  ;;  %v2517_v20 = vrot.slane %v2516_v7, 2 }
 0x377   :  { %2026 = vst.msk [vmem:[%s4144_s10 + $0x10] sm:$0xff] %vm107_vm0, %v2022_v33 }
 0x378   :  { %2027 = vst.msk [vmem:[%s4144_s10 + $0x18] sm:$0xff] %vm107_vm0, %v2023_v45  ;;  %v2518_v41 = vadd.f32 %v2517_v20, %v2516_v7 }
 0x37a   :  { %v2519_v61 = vrot.slane %v2518_v41, 1 }
 0x37c   :  { %v2520_v4 = vadd.f32 %v2519_v61, %v2518_v41 }
 0x37e   :  { %v2521_v46 = vmul.f32 %v2520_v4, %v4184_v9 }
 0x380   :  { %v2522_v8 = vadd.f32 1e-05, %v2521_v46 }
 0x382   :  { %2627 = vrsqrt.f32 %v2522_v8  ;;  %vm2529_vm1 = vweird.f32 %v2522_v8 }
 0x388   :  { %v2628_v29 = vpop.eup %2627 }
 0x389   :  { %v2524_v14 = vmul.f32 %v2628_v29, %v2522_v8  ;;  %vm2530_vm15 = vweird.f32 %v2628_v29 }
 0x38a   :  { %vm2531_vm2 = vmor %vm2529_vm1, %vm2530_vm15 }
 0x38b   :  { %v2525_v0 = vmul.f32 %v2628_v29, %v2524_v14 }
 0x38d   :  { %v2526_v56 = vmul.f32 0.5, %v2525_v0 }
 0x38f   :  { %v2527_v11 = vsub.f32 1.5, %v2526_v56 }
 0x391   :  { %v2528_v44 = vmul.f32 %v2628_v29, %v2527_v11 }
 0x393   :  { %v2532_v47 = vsel %vm2531_vm2, %v2628_v29, %v2528_v44 }
 0x394   :  { %v2533_v50 = vmul.f32 %v2532_v47, %v4061_v35  ;;  %v2534_v49 = vmul.f32 %v2532_v47, %v4063_v60  ;;  %v2535_v13 = vmul.f32 %v2532_v47, %v4065_v32  ;;  %v2536_v9 = vmul.f32 %v2532_v47, %v4067_v18 }
 0x396   :  { %v2537_v24 = vmul.f32 %v2533_v50, %v4056_v19  ;;  %v2538_v17 = vmul.f32 %v2534_v49, %v4058_v28  ;;  %v2539_v26 = vmul.f32 %v2535_v13, %v4069_v36  ;;  %v2540_v25 = vmul.f32 %v2536_v9, %v4071_v58 }
 0x398   :  { %v2541_v3 = vadd.f32 %v2537_v24, %v2003_v31  ;;  %v2542_v15 = vadd.f32 %v2538_v17, %v2008_v16  ;;  %v2543_v59 = vadd.f32 %v2539_v26, %v2013_v55  ;;  %v2544_v34 = vadd.f32 %v2540_v25, %v2018_v23 }
 0x39a   :  { %2559 = vst.msk [vmem:[%s4144_s10 + $0x20] sm:$0xff] %vm107_vm0, %v2541_v3 }
 0x39b   :  { %2560 = vst.msk [vmem:[%s4144_s10 + $0x28] sm:$0xff] %vm107_vm0, %v2542_v15 }
 0x39c   :  { %2561 = vst.msk [vmem:[%s4144_s10 + $0x30] sm:$0xff] %vm107_vm0, %v2543_v59 }
 0x39d   :  { %2562 = vst.msk [vmem:[%s4144_s10 + $0x38] sm:$0xff] %vm107_vm0, %v2544_v34 }
 0x39e   :  { %2554 = vsyncpa [#allocation3], 1 }

</bundles_post_ra>
